<compile_context>
chip_gen: v7x
topology: tpu7x:2x2x1
jax: 0.10.0
libtpu: 0.0.40
codegen_flags: <defaults>
</compile_context>

<pallas_src>
import jax
import jax.numpy as jnp
from jax.experimental import pallas as pl
from jax.experimental.pallas import tpu as pltpu


def _round_up(x, m):
    return ((x + m - 1) // m) * m


def _pad2d(a, rows, cols):
    r, c = a.shape
    return jnp.pad(a, ((0, rows - r), (0, cols - c)))


# ----------------------------------------------------------------------------
# Kernel A: generic tiled  (M,K) @ (K,N) + bias  (K fully resident per tile).
# ----------------------------------------------------------------------------
def matmul_bias_kernel(x_ref, w_ref, b_ref, o_ref):
    o_ref[...] = (jnp.dot(x_ref[...], w_ref[...],
                          preferred_element_type=jnp.float32)
                  + b_ref[...]).astype(o_ref.dtype)


def matmul_bias(x, w, b, *, tm=256, tn=512, out_dtype=jnp.float32,
                vmem_limit_bytes=48 * 1024 * 1024):
    """y[m, n] = x[m, :] @ w[:, n] + b[0, n]; (M,N)-parallel grid, padded tiles."""
    M, K = x.shape
    N = w.shape[1]
    # Tiles: keep M-tiles sublane-aligned (x8) and N-tiles lane-aligned (x128);
    # pad (never fall back to a resident full-dim block for large N).
    tm = min(tm, _round_up(M, 8))
    tn = min(tn, _round_up(N, 128))
    Mp, Np = _round_up(M, tm), _round_up(N, tn)
    if Mp != M:
        x = jnp.pad(x, ((0, Mp - M), (0, 0)))
    if Np != N:
        w = jnp.pad(w, ((0, 0), (0, Np - N)))
        b = jnp.pad(b, ((0, 0), (0, Np - N)))
    out = pl.pallas_call(
        matmul_bias_kernel,
        out_shape=jax.ShapeDtypeStruct((Mp, Np), out_dtype),
        grid_spec=pltpu.PrefetchScalarGridSpec(
            num_scalar_prefetch=0,
            grid=(Mp // tm, Np // tn),
            in_specs=[
                pl.BlockSpec((tm, K), lambda i, j: (i, 0)),
                pl.BlockSpec((K, tn), lambda i, j: (0, j)),
                pl.BlockSpec((1, tn), lambda i, j: (0, j)),
            ],
            out_specs=pl.BlockSpec((tm, tn), lambda i, j: (i, j)),
        ),
        compiler_params=pltpu.CompilerParams(
            dimension_semantics=("parallel", "parallel"),
            vmem_limit_bytes=vmem_limit_bytes),
    )(x, w, b)
    if (Mp, Np) != (M, N):
        out = out[:M, :N]
    return out


# ----------------------------------------------------------------------------
# Kernel B: GRU recurrence, streamed over T-chunks with a VMEM h-carry.
# ----------------------------------------------------------------------------
def gru_recurrence_kernel(gx_ref, feat_ref, whzr_ref, whh_ref, hseq_ref, h_scr):
    # gx_ref:   (Tc, B, 3H)  precomputed x@Wx + b, time-major
    # feat_ref: (B, H)       initial hidden state (image features)
    # whzr_ref: (H, 2H)      [Wz_h | Wr_h]
    # whh_ref:  (H, H)       Wh_h (applied to r*h)
    # hseq_ref: (Tc, B, H)   per-step hidden states (output chunk)
    # h_scr:    (B, H) f32   hidden-state carry across grid steps
    tc = gx_ref.shape[0]
    H = whh_ref.shape[0]

    @pl.when(pl.program_id(0) == 0)
    def _init():
        h_scr[...] = feat_ref[...].astype(jnp.float32)

    # Loop-invariant weight loads hoisted out of the time loop.
    wh_zr = whzr_ref[...]
    whh = whh_ref[...]

    def step(t, h):
        gx = gx_ref[t].astype(jnp.float32)                              # (B, 3H)
        gh = jnp.dot(h.astype(wh_zr.dtype), wh_zr,
                     preferred_element_type=jnp.float32)                # (B, 2H)
        z = jax.nn.sigmoid(gx[:, :H] + gh[:, :H])
        r = jax.nn.sigmoid(gx[:, H:2 * H] + gh[:, H:])
        rh = (r * h).astype(whh.dtype)
        h_tilde = jnp.tanh(gx[:, 2 * H:]
                           + jnp.dot(rh, whh, preferred_element_type=jnp.float32))
        h_new = (1.0 - z) * h + z * h_tilde
        hseq_ref[t] = h_new.astype(hseq_ref.dtype)
        return h_new

    # Modest fixed unroll: keeps the MXU fed without vreg-pressure blowup.
    h_final = jax.lax.fori_loop(0, tc, step, h_scr[...], unroll=min(4, tc))
    h_scr[...] = h_final


# ----------------------------------------------------------------------------
# Kernel C: vocab projection, writes logits directly in (B, T, V) layout.
# ----------------------------------------------------------------------------
def vocab_projection_kernel(h_ref, wo_ref, bo_ref, out_ref):
    # h_ref:  (Tt, B, H)  time-major hidden tile
    # wo_ref: (H, tn)     Wo column tile, bo_ref: (1, tn)
    # out_ref:(B, Tt, tn) batch-major logits tile  -> no HBM transpose pass
    tt, b, _ = h_ref.shape
    tn = out_ref.shape[2]
    wo = wo_ref[...]
    bo = jnp.broadcast_to(bo_ref[...], (b, tn))     # hoisted broadcast
    for t in range(tt):   # static unroll; each is a (B,H)@(H,tn) MXU matmul
        out_ref[:, t, :] = (jnp.dot(h_ref[t], wo,
                                    preferred_element_type=jnp.float32)
                            + bo).astype(out_ref.dtype)


# ----------------------------------------------------------------------------
# Wrapper
# ----------------------------------------------------------------------------
def decoder_gru_forward(features, captions, params, *,
                        compute_dtype=jnp.float32, tc=4):
    """features: (B, H) f32, captions: (B, T) int32 -> logits (B, T, V) f32."""
    B, T = captions.shape
    E = params["embedding"].shape[1]
    H = params["Wz_h"].shape[0]
    V = params["Wo"].shape[1]

    Hp = _round_up(H, 128)          # lane-aligned gate slices / h stores
    Vp = _round_up(V, 128)          # lane-dense, streamable Wo tiles
    Bp = _round_up(B, 8)            # sublane-dense batch rows
    cd = compute_dtype

    # --- plain-JAX glue: pad + fuse gate weights (once per call) -------------
    wx_cat = jnp.concatenate(
        [_pad2d(params["Wz_x"], E, Hp), _pad2d(params["Wr_x"], E, Hp),
         _pad2d(params["Wh_x"], E, Hp)], axis=1).astype(cd)            # (E, 3Hp)
    b_cat = jnp.concatenate(
        [_pad2d(params["bz"], 1, Hp), _pad2d(params["br"], 1, Hp),
         _pad2d(params["bh"], 1, Hp)], axis=1)                          # (1, 3Hp)
    wh_zr = jnp.concatenate(
        [_pad2d(params["Wz_h"], Hp, Hp), _pad2d(params["Wr_h"], Hp, Hp)],
        axis=1).astype(cd)                                              # (Hp, 2Hp)
    whh = _pad2d(params["Wh_h"], Hp, Hp).astype(cd)                     # (Hp, Hp)
    wo = _pad2d(params["Wo"], Hp, Vp).astype(cd)                        # (Hp, Vp)
    bo = _pad2d(params["bo"], 1, Vp)                                    # (1, Vp)

    feat_p = _pad2d(features, Bp, Hp).astype(jnp.float32)               # (Bp, Hp)
    cap_p = jnp.pad(captions, ((0, Bp - B), (0, 0)))                    # (Bp, T)

    # Embedding gather (XLA glue), produced time-major so the recurrence only
    # ever indexes the leading axis.
    x_tbe = params["embedding"][cap_p.T].astype(cd)                     # (T, Bp, E)

    # --- Kernel A: hoisted input projection GX = x @ Wx_cat + b --------------
    gx = matmul_bias(x_tbe.reshape(T * Bp, E), wx_cat, b_cat,
                     out_dtype=cd).reshape(T, Bp, 3 * Hp)

    # --- Kernel B: streamed GRU recurrence -----------------------------------
    tc = max(1, min(tc, T))
    while T % tc:
        tc -= 1
    h_seq = pl.pallas_call(
        gru_recurrence_kernel,
        out_shape=jax.ShapeDtypeStruct((T, Bp, Hp), cd),
        grid_spec=pltpu.PrefetchScalarGridSpec(
            num_scalar_prefetch=0,
            grid=(T // tc,),
            in_specs=[
                pl.BlockSpec((tc, Bp, 3 * Hp), lambda i: (i, 0, 0)),
                pl.BlockSpec((Bp, Hp), lambda i: (0, 0)),
                pl.BlockSpec((Hp, 2 * Hp), lambda i: (0, 0)),
                pl.BlockSpec((Hp, Hp), lambda i: (0, 0)),
            ],
            out_specs=pl.BlockSpec((tc, Bp, Hp), lambda i: (i, 0, 0)),
            scratch_shapes=[pltpu.VMEM((Bp, Hp), jnp.float32)],
        ),
        compiler_params=pltpu.CompilerParams(
            dimension_semantics=("arbitrary",),
            vmem_limit_bytes=48 * 1024 * 1024),
    )(gx, feat_p, wh_zr, whh)

    # --- Kernel C: vocab projection, (B,T,V) output layout --------------------
    tt = 8 if T % 8 == 0 else T                 # out-block 2nd-to-last dim rule
    tn = next(c for c in (512, 256, 128) if Vp % c == 0)
    logits_p = pl.pallas_call(
        vocab_projection_kernel,
        out_shape=jax.ShapeDtypeStruct((Bp, T, Vp), jnp.float32),
        grid_spec=pltpu.PrefetchScalarGridSpec(
            num_scalar_prefetch=0,
            grid=(T // tt, Vp // tn),
            in_specs=[
                pl.BlockSpec((tt, Bp, Hp), lambda i, j: (i, 0, 0)),
                pl.BlockSpec((Hp, tn), lambda i, j: (0, j)),
                pl.BlockSpec((1, tn), lambda i, j: (0, j)),
            ],
            out_specs=pl.BlockSpec((Bp, tt, tn), lambda i, j: (0, i, j)),
        ),
        compiler_params=pltpu.CompilerParams(
            dimension_semantics=("parallel", "parallel"),
            vmem_limit_bytes=48 * 1024 * 1024),
    )(h_seq, wo, bo)

    return logits_p[:B, :, :V]


# ----------------------------------------------------------------------------
# Params / reference
# ----------------------------------------------------------------------------
def make_params(key, embed_size, hidden_size, vocab_size):
    ks = jax.random.split(key, 9)
    s = 0.1
    # PyTorch Linear(E+H -> H) weight is (H, E+H); stored transposed and split:
    # W_x (E,H), W_h (H,H).
    return {
        "embedding": s * jax.random.normal(ks[0], (vocab_size, embed_size), jnp.float32),
        "Wz_x": s * jax.random.normal(ks[1], (embed_size, hidden_size), jnp.float32),
        "Wz_h": s * jax.random.normal(ks[2], (hidden_size, hidden_size), jnp.float32),
        "bz":   jnp.zeros((1, hidden_size), jnp.float32),
        "Wr_x": s * jax.random.normal(ks[3], (embed_size, hidden_size), jnp.float32),
        "Wr_h": s * jax.random.normal(ks[4], (hidden_size, hidden_size), jnp.float32),
        "br":   jnp.zeros((1, hidden_size), jnp.float32),
        "Wh_x": s * jax.random.normal(ks[5], (embed_size, hidden_size), jnp.float32),
        "Wh_h": s * jax.random.normal(ks[6], (hidden_size, hidden_size), jnp.float32),
        "bh":   jnp.zeros((1, hidden_size), jnp.float32),
        "Wo":   s * jax.random.normal(ks[7], (hidden_size, vocab_size), jnp.float32),
        "bo":   0.01 * jax.random.normal(ks[8], (1, vocab_size), jnp.float32),
    }


def reference_forward(features, captions, params):
    """Pure-JAX mirror of the PyTorch forward (for correctness check)."""
    emb = params["embedding"][captions]                  # (B, T, E)
    B, T, _ = emb.shape
    h = features
    outs = []
    for t in range(T):
        x_t = emb[:, t, :]
        z = jax.nn.sigmoid(x_t @ params["Wz_x"] + h @ params["Wz_h"] + params["bz"])
        r = jax.nn.sigmoid(x_t @ params["Wr_x"] + h @ params["Wr_h"] + params["br"])
        h_tilde = jnp.tanh(x_t @ params["Wh_x"] + (r * h) @ params["Wh_h"] + params["bh"])
        h = (1.0 - z) * h + z * h_tilde
        outs.append(h @ params["Wo"] + params["bo"])
    return jnp.stack(outs, axis=1)                       # (B, T, V)


if __name__ == "__main__":
    B, T = 2, 8
    embed_size, hidden_size, vocab_size = 32, 32, 64

    key = jax.random.PRNGKey(0)
    k_feat, k_cap, k_param = jax.random.split(key, 3)

    features = jax.random.normal(k_feat, (B, hidden_size), jnp.float32)
    captions = jax.random.randint(k_cap, (B, T), 0, vocab_size, jnp.int32)
    params = make_params(k_param, embed_size, hidden_size, vocab_size)

    fwd = jax.jit(decoder_gru_forward)
    out = jax.block_until_ready(fwd(features, captions, params))

    ref = reference_forward(features, captions, params)
    assert out.shape == (B, T, vocab_size)
    assert jnp.allclose(out, ref, atol=1e-4, rtol=1e-4), "mismatch vs reference"

    print("KERNEL_OK")
</pallas_src>

<mosaic_0001>
module attributes {stable_mosaic.version = 11 : i64} {
  func.func @matmul_bias_kernel(%arg0: i32, %arg1: i32, %arg2: memref<64x32xf32, #tpu.memory_space<vmem>>, %arg3: memref<32x384xf32, #tpu.memory_space<vmem>>, %arg4: memref<1x384xf32, #tpu.memory_space<vmem>>, %arg5: memref<64x384xf32, #tpu.memory_space<vmem>>) attributes {dimension_semantics = [#tpu.dimension_semantics<parallel>, #tpu.dimension_semantics<parallel>], iteration_bounds = array<i64: 1, 1>, scalar_prefetch = 0 : i64, scratch_operands = 0 : i64, tpu.core_type = #tpu.core_type<tc>, window_params = [{transform_indices = @transform_0, window_bounds = array<i64: 64, 32>}, {transform_indices = @transform_1, window_bounds = array<i64: 32, 384>}, {transform_indices = @transform_2, window_bounds = array<i64: 1, 384>}, {transform_indices = @transform_3, window_bounds = array<i64: 64, 384>}]} {
    %c0 = arith.constant 0 : index
    %c0_0 = arith.constant 0 : index
    %0 = vector.load %arg2[%c0, %c0_0] : memref<64x32xf32, #tpu.memory_space<vmem>>, vector<64x32xf32>
    %c0_1 = arith.constant 0 : index
    %c0_2 = arith.constant 0 : index
    %1 = vector.load %arg3[%c0_1, %c0_2] : memref<32x384xf32, #tpu.memory_space<vmem>>, vector<32x384xf32>
    %cst = arith.constant dense<0.000000e+00> : vector<64x384xf32>
    %2 = tpu.matmul %0, %1, %cst {dimension_numbers = #tpu.dot_dimension_numbers<[1], [0], [0], [1], [0, 0, 1, 1], [], []>} : vector<64x32xf32>, vector<32x384xf32>, vector<64x384xf32> -> vector<64x384xf32>
    %c0_3 = arith.constant 0 : index
    %c0_4 = arith.constant 0 : index
    %3 = vector.load %arg4[%c0_3, %c0_4] : memref<1x384xf32, #tpu.memory_space<vmem>>, vector<1x384xf32>
    %4 = vector.broadcast %3 : vector<1x384xf32> to vector<64x384xf32>
    %5 = arith.addf %2, %4 : vector<64x384xf32>
    %c0_5 = arith.constant 0 : index
    %c0_6 = arith.constant 0 : index
    %6 = vector.load %arg5[%c0_5, %c0_6] : memref<64x384xf32, #tpu.memory_space<vmem>>, vector<64x384xf32>
    tpu.vector_store %arg5[%c0_5, %c0_6], %5 {strides = array<i32>} : memref<64x384xf32, #tpu.memory_space<vmem>>, vector<64x384xf32>,
    return
  }
  func.func @transform_0(%arg0: i32, %arg1: i32) -> (i32, i32) {
    %c0_i32 = arith.constant 0 : i32
    %c0_i32_0 = arith.constant 0 : i32
    return %arg0, %c0_i32 : i32, i32
  }
  func.func @transform_1(%arg0: i32, %arg1: i32) -> (i32, i32) {
    %c0_i32 = arith.constant 0 : i32
    %c0_i32_0 = arith.constant 0 : i32
    return %c0_i32, %arg1 : i32, i32
  }
  func.func @transform_2(%arg0: i32, %arg1: i32) -> (i32, i32) {
    %c0_i32 = arith.constant 0 : i32
    %c0_i32_0 = arith.constant 0 : i32
    return %c0_i32, %arg1 : i32, i32
  }
  func.func @transform_3(%arg0: i32, %arg1: i32) -> (i32, i32) {
    %c0_i32 = arith.constant 0 : i32
    return %arg0, %arg1 : i32, i32
  }
}

module attributes {stable_mosaic.version = 11 : i64} {
  func.func @gru_recurrence_kernel(%arg0: i32, %arg1: memref<4x8x384xf32, #tpu.memory_space<vmem>>, %arg2: memref<8x128xf32, #tpu.memory_space<vmem>>, %arg3: memref<128x256xf32, #tpu.memory_space<vmem>>, %arg4: memref<128x128xf32, #tpu.memory_space<vmem>>, %arg5: memref<4x8x128xf32, #tpu.memory_space<vmem>>, %arg6: memref<8x128xf32, #tpu.memory_space<vmem>>) attributes {dimension_semantics = [#tpu.dimension_semantics<arbitrary>], iteration_bounds = array<i64: 2>, scalar_prefetch = 0 : i64, scratch_operands = 1 : i64, tpu.core_type = #tpu.core_type<tc>, window_params = [{transform_indices = @transform_0, window_bounds = array<i64: 4, 8, 384>}, {pipeline_mode = #tpu.pipeline_mode<synchronous>, transform_indices = @transform_1, window_bounds = array<i64: 8, 128>}, {pipeline_mode = #tpu.pipeline_mode<synchronous>, transform_indices = @transform_2, window_bounds = array<i64: 128, 256>}, {pipeline_mode = #tpu.pipeline_mode<synchronous>, transform_indices = @transform_3, window_bounds = array<i64: 128, 128>}, {transform_indices = @transform_4, window_bounds = array<i64: 4, 8, 128>}]} {
    %c0_i32 = arith.constant 0 : i32
    %0 = arith.cmpi eq, %arg0, %c0_i32 : i32
    %1 = arith.extui %0 : i1 to i32
    %c0_i32_0 = arith.constant 0 : i32
    %2 = arith.cmpi ne, %1, %c0_i32_0 : i32
    scf.if %2 {
      %c0_44 = arith.constant 0 : index
      %c0_45 = arith.constant 0 : index
      %143 = vector.load %arg2[%c0_44, %c0_45] : memref<8x128xf32, #tpu.memory_space<vmem>>, vector<8x128xf32>
      %c0_46 = arith.constant 0 : index
      %c0_47 = arith.constant 0 : index
      %144 = vector.load %arg6[%c0_46, %c0_47] : memref<8x128xf32, #tpu.memory_space<vmem>>, vector<8x128xf32>
      tpu.vector_store %arg6[%c0_46, %c0_47], %143 {strides = array<i32>} : memref<8x128xf32, #tpu.memory_space<vmem>>, vector<8x128xf32>,
    } else {
    }
    %c0 = arith.constant 0 : index
    %c0_1 = arith.constant 0 : index
    %3 = vector.load %arg3[%c0, %c0_1] : memref<128x256xf32, #tpu.memory_space<vmem>>, vector<128x256xf32>
    %c0_2 = arith.constant 0 : index
    %c0_3 = arith.constant 0 : index
    %4 = vector.load %arg4[%c0_2, %c0_3] : memref<128x128xf32, #tpu.memory_space<vmem>>, vector<128x128xf32>
    %c0_4 = arith.constant 0 : index
    %c0_5 = arith.constant 0 : index
    %5 = vector.load %arg6[%c0_4, %c0_5] : memref<8x128xf32, #tpu.memory_space<vmem>>, vector<8x128xf32>
    %c0_i32_6 = arith.constant 0 : i32
    %6 = arith.index_cast %c0_i32_6 : i32 to index
    %c0_7 = arith.constant 0 : index
    %c0_8 = arith.constant 0 : index
    %7 = vector.load %arg1[%6, %c0_7, %c0_8] : memref<4x8x384xf32, #tpu.memory_space<vmem>>, vector<1x8x384xf32>
    %8 = vector.shape_cast %7 : vector<1x8x384xf32> to vector<8x384xf32>
    %cst = arith.constant dense<0.000000e+00> : vector<8x256xf32>
    %9 = tpu.matmul %5, %3, %cst {dimension_numbers = #tpu.dot_dimension_numbers<[1], [0], [0], [1], [0, 0, 1, 1], [], []>} : vector<8x128xf32>, vector<128x256xf32>, vector<8x256xf32> -> vector<8x256xf32>
    %10 = vector.extract_strided_slice %8 {offsets = [0, 0], sizes = [8, 128], strides = [1, 1]} : vector<8x384xf32> to vector<8x128xf32>
    %11 = vector.extract_strided_slice %9 {offsets = [0, 0], sizes = [8, 128], strides = [1, 1]} : vector<8x256xf32> to vector<8x128xf32>
    %12 = arith.addf %10, %11 : vector<8x128xf32>
    %13 = arith.negf %12 : vector<8x128xf32>
    %14 = math.exp %13 : vector<8x128xf32>
    %cst_9 = arith.constant 1.000000e+00 : f32
    %15 = vector.broadcast %cst_9 : f32 to vector<8x128xf32>
    %16 = arith.addf %15, %14 : vector<8x128xf32>
    %17 = arith.divf %15, %16 : vector<8x128xf32>
    %18 = vector.extract_strided_slice %8 {offsets = [0, 128], sizes = [8, 128], strides = [1, 1]} : vector<8x384xf32> to vector<8x128xf32>
    %19 = vector.extract_strided_slice %9 {offsets = [0, 128], sizes = [8, 128], strides = [1, 1]} : vector<8x256xf32> to vector<8x128xf32>
    %20 = arith.addf %18, %19 : vector<8x128xf32>
    %21 = arith.negf %20 : vector<8x128xf32>
    %22 = math.exp %21 : vector<8x128xf32>
    %cst_10 = arith.constant 1.000000e+00 : f32
    %23 = vector.broadcast %cst_10 : f32 to vector<8x128xf32>
    %24 = arith.addf %23, %22 : vector<8x128xf32>
    %25 = arith.divf %23, %24 : vector<8x128xf32>
    %26 = arith.mulf %25, %5 : vector<8x128xf32>
    %27 = vector.extract_strided_slice %8 {offsets = [0, 256], sizes = [8, 128], strides = [1, 1]} : vector<8x384xf32> to vector<8x128xf32>
    %cst_11 = arith.constant dense<0.000000e+00> : vector<8x128xf32>
    %28 = tpu.matmul %26, %4, %cst_11 {dimension_numbers = #tpu.dot_dimension_numbers<[1], [0], [0], [1], [0, 0, 1, 1], [], []>} : vector<8x128xf32>, vector<128x128xf32>, vector<8x128xf32> -> vector<8x128xf32>
    %29 = arith.addf %27, %28 : vector<8x128xf32>
    %30 = math.tanh %29 : vector<8x128xf32>
    %cst_12 = arith.constant 1.000000e+00 : f32
    %31 = vector.broadcast %cst_12 : f32 to vector<8x128xf32>
    %32 = arith.subf %31, %17 : vector<8x128xf32>
    %33 = arith.mulf %32, %5 : vector<8x128xf32>
    %34 = arith.mulf %17, %30 : vector<8x128xf32>
    %35 = arith.addf %33, %34 : vector<8x128xf32>
    %36 = arith.index_cast %c0_i32_6 : i32 to index
    %c0_13 = arith.constant 0 : index
    %c0_14 = arith.constant 0 : index
    %37 = vector.load %arg5[%36, %c0_13, %c0_14] : memref<4x8x128xf32, #tpu.memory_space<vmem>>, vector<1x8x128xf32>
    %38 = vector.shape_cast %37 : vector<1x8x128xf32> to vector<8x128xf32>
    %39 = vector.shape_cast %35 : vector<8x128xf32> to vector<1x8x128xf32>
    tpu.vector_store %arg5[%36, %c0_13, %c0_14], %39 {strides = array<i32>} : memref<4x8x128xf32, #tpu.memory_space<vmem>>, vector<1x8x128xf32>,
    %c1_i32 = arith.constant 1 : i32
    %40 = arith.index_cast %c1_i32 : i32 to index
    %c0_15 = arith.constant 0 : index
    %c0_16 = arith.constant 0 : index
    %41 = vector.load %arg1[%40, %c0_15, %c0_16] : memref<4x8x384xf32, #tpu.memory_space<vmem>>, vector<1x8x384xf32>
    %42 = vector.shape_cast %41 : vector<1x8x384xf32> to vector<8x384xf32>
    %cst_17 = arith.constant dense<0.000000e+00> : vector<8x256xf32>
    %43 = tpu.matmul %35, %3, %cst_17 {dimension_numbers = #tpu.dot_dimension_numbers<[1], [0], [0], [1], [0, 0, 1, 1], [], []>} : vector<8x128xf32>, vector<128x256xf32>, vector<8x256xf32> -> vector<8x256xf32>
    %44 = vector.extract_strided_slice %42 {offsets = [0, 0], sizes = [8, 128], strides = [1, 1]} : vector<8x384xf32> to vector<8x128xf32>
    %45 = vector.extract_strided_slice %43 {offsets = [0, 0], sizes = [8, 128], strides = [1, 1]} : vector<8x256xf32> to vector<8x128xf32>
    %46 = arith.addf %44, %45 : vector<8x128xf32>
    %47 = arith.negf %46 : vector<8x128xf32>
    %48 = math.exp %47 : vector<8x128xf32>
    %cst_18 = arith.constant 1.000000e+00 : f32
    %49 = vector.broadcast %cst_18 : f32 to vector<8x128xf32>
    %50 = arith.addf %49, %48 : vector<8x128xf32>
    %51 = arith.divf %49, %50 : vector<8x128xf32>
    %52 = vector.extract_strided_slice %42 {offsets = [0, 128], sizes = [8, 128], strides = [1, 1]} : vector<8x384xf32> to vector<8x128xf32>
    %53 = vector.extract_strided_slice %43 {offsets = [0, 128], sizes = [8, 128], strides = [1, 1]} : vector<8x256xf32> to vector<8x128xf32>
    %54 = arith.addf %52, %53 : vector<8x128xf32>
    %55 = arith.negf %54 : vector<8x128xf32>
    %56 = math.exp %55 : vector<8x128xf32>
    %cst_19 = arith.constant 1.000000e+00 : f32
    %57 = vector.broadcast %cst_19 : f32 to vector<8x128xf32>
    %58 = arith.addf %57, %56 : vector<8x128xf32>
    %59 = arith.divf %57, %58 : vector<8x128xf32>
    %60 = arith.mulf %59, %35 : vector<8x128xf32>
    %61 = vector.extract_strided_slice %42 {offsets = [0, 256], sizes = [8, 128], strides = [1, 1]} : vector<8x384xf32> to vector<8x128xf32>
    %cst_20 = arith.constant dense<0.000000e+00> : vector<8x128xf32>
    %62 = tpu.matmul %60, %4, %cst_20 {dimension_numbers = #tpu.dot_dimension_numbers<[1], [0], [0], [1], [0, 0, 1, 1], [], []>} : vector<8x128xf32>, vector<128x128xf32>, vector<8x128xf32> -> vector<8x128xf32>
    %63 = arith.addf %61, %62 : vector<8x128xf32>
    %64 = math.tanh %63 : vector<8x128xf32>
    %cst_21 = arith.constant 1.000000e+00 : f32
    %65 = vector.broadcast %cst_21 : f32 to vector<8x128xf32>
    %66 = arith.subf %65, %51 : vector<8x128xf32>
    %67 = arith.mulf %66, %35 : vector<8x128xf32>
    %68 = arith.mulf %51, %64 : vector<8x128xf32>
    %69 = arith.addf %67, %68 : vector<8x128xf32>
    %70 = arith.index_cast %c1_i32 : i32 to index
    %c0_22 = arith.constant 0 : index
    %c0_23 = arith.constant 0 : index
    %71 = vector.load %arg5[%70, %c0_22, %c0_23] : memref<4x8x128xf32, #tpu.memory_space<vmem>>, vector<1x8x128xf32>
    %72 = vector.shape_cast %71 : vector<1x8x128xf32> to vector<8x128xf32>
    %73 = vector.shape_cast %69 : vector<8x128xf32> to vector<1x8x128xf32>
    tpu.vector_store %arg5[%70, %c0_22, %c0_23], %73 {strides = array<i32>} : memref<4x8x128xf32, #tpu.memory_space<vmem>>, vector<1x8x128xf32>,
    %c2_i32 = arith.constant 2 : i32
    %74 = arith.index_cast %c2_i32 : i32 to index
    %c0_24 = arith.constant 0 : index
    %c0_25 = arith.constant 0 : index
    %75 = vector.load %arg1[%74, %c0_24, %c0_25] : memref<4x8x384xf32, #tpu.memory_space<vmem>>, vector<1x8x384xf32>
    %76 = vector.shape_cast %75 : vector<1x8x384xf32> to vector<8x384xf32>
    %cst_26 = arith.constant dense<0.000000e+00> : vector<8x256xf32>
    %77 = tpu.matmul %69, %3, %cst_26 {dimension_numbers = #tpu.dot_dimension_numbers<[1], [0], [0], [1], [0, 0, 1, 1], [], []>} : vector<8x128xf32>, vector<128x256xf32>, vector<8x256xf32> -> vector<8x256xf32>
    %78 = vector.extract_strided_slice %76 {offsets = [0, 0], sizes = [8, 128], strides = [1, 1]} : vector<8x384xf32> to vector<8x128xf32>
    %79 = vector.extract_strided_slice %77 {offsets = [0, 0], sizes = [8, 128], strides = [1, 1]} : vector<8x256xf32> to vector<8x128xf32>
    %80 = arith.addf %78, %79 : vector<8x128xf32>
    %81 = arith.negf %80 : vector<8x128xf32>
    %82 = math.exp %81 : vector<8x128xf32>
    %cst_27 = arith.constant 1.000000e+00 : f32
    %83 = vector.broadcast %cst_27 : f32 to vector<8x128xf32>
    %84 = arith.addf %83, %82 : vector<8x128xf32>
    %85 = arith.divf %83, %84 : vector<8x128xf32>
    %86 = vector.extract_strided_slice %76 {offsets = [0, 128], sizes = [8, 128], strides = [1, 1]} : vector<8x384xf32> to vector<8x128xf32>
    %87 = vector.extract_strided_slice %77 {offsets = [0, 128], sizes = [8, 128], strides = [1, 1]} : vector<8x256xf32> to vector<8x128xf32>
    %88 = arith.addf %86, %87 : vector<8x128xf32>
    %89 = arith.negf %88 : vector<8x128xf32>
    %90 = math.exp %89 : vector<8x128xf32>
    %cst_28 = arith.constant 1.000000e+00 : f32
    %91 = vector.broadcast %cst_28 : f32 to vector<8x128xf32>
    %92 = arith.addf %91, %90 : vector<8x128xf32>
    %93 = arith.divf %91, %92 : vector<8x128xf32>
    %94 = arith.mulf %93, %69 : vector<8x128xf32>
    %95 = vector.extract_strided_slice %76 {offsets = [0, 256], sizes = [8, 128], strides = [1, 1]} : vector<8x384xf32> to vector<8x128xf32>
    %cst_29 = arith.constant dense<0.000000e+00> : vector<8x128xf32>
    %96 = tpu.matmul %94, %4, %cst_29 {dimension_numbers = #tpu.dot_dimension_numbers<[1], [0], [0], [1], [0, 0, 1, 1], [], []>} : vector<8x128xf32>, vector<128x128xf32>, vector<8x128xf32> -> vector<8x128xf32>
    %97 = arith.addf %95, %96 : vector<8x128xf32>
    %98 = math.tanh %97 : vector<8x128xf32>
    %cst_30 = arith.constant 1.000000e+00 : f32
    %99 = vector.broadcast %cst_30 : f32 to vector<8x128xf32>
    %100 = arith.subf %99, %85 : vector<8x128xf32>
    %101 = arith.mulf %100, %69 : vector<8x128xf32>
    %102 = arith.mulf %85, %98 : vector<8x128xf32>
    %103 = arith.addf %101, %102 : vector<8x128xf32>
    %104 = arith.index_cast %c2_i32 : i32 to index
    %c0_31 = arith.constant 0 : index
    %c0_32 = arith.constant 0 : index
    %105 = vector.load %arg5[%104, %c0_31, %c0_32] : memref<4x8x128xf32, #tpu.memory_space<vmem>>, vector<1x8x128xf32>
    %106 = vector.shape_cast %105 : vector<1x8x128xf32> to vector<8x128xf32>
    %107 = vector.shape_cast %103 : vector<8x128xf32> to vector<1x8x128xf32>
    tpu.vector_store %arg5[%104, %c0_31, %c0_32], %107 {strides = array<i32>} : memref<4x8x128xf32, #tpu.memory_space<vmem>>, vector<1x8x128xf32>,
    %c3_i32 = arith.constant 3 : i32
    %108 = arith.index_cast %c3_i32 : i32 to index
    %c0_33 = arith.constant 0 : index
    %c0_34 = arith.constant 0 : index
    %109 = vector.load %arg1[%108, %c0_33, %c0_34] : memref<4x8x384xf32, #tpu.memory_space<vmem>>, vector<1x8x384xf32>
    %110 = vector.shape_cast %109 : vector<1x8x384xf32> to vector<8x384xf32>
    %cst_35 = arith.constant dense<0.000000e+00> : vector<8x256xf32>
    %111 = tpu.matmul %103, %3, %cst_35 {dimension_numbers = #tpu.dot_dimension_numbers<[1], [0], [0], [1], [0, 0, 1, 1], [], []>} : vector<8x128xf32>, vector<128x256xf32>, vector<8x256xf32> -> vector<8x256xf32>
    %112 = vector.extract_strided_slice %110 {offsets = [0, 0], sizes = [8, 128], strides = [1, 1]} : vector<8x384xf32> to vector<8x128xf32>
    %113 = vector.extract_strided_slice %111 {offsets = [0, 0], sizes = [8, 128], strides = [1, 1]} : vector<8x256xf32> to vector<8x128xf32>
    %114 = arith.addf %112, %113 : vector<8x128xf32>
    %115 = arith.negf %114 : vector<8x128xf32>
    %116 = math.exp %115 : vector<8x128xf32>
    %cst_36 = arith.constant 1.000000e+00 : f32
    %117 = vector.broadcast %cst_36 : f32 to vector<8x128xf32>
    %118 = arith.addf %117, %116 : vector<8x128xf32>
    %119 = arith.divf %117, %118 : vector<8x128xf32>
    %120 = vector.extract_strided_slice %110 {offsets = [0, 128], sizes = [8, 128], strides = [1, 1]} : vector<8x384xf32> to vector<8x128xf32>
    %121 = vector.extract_strided_slice %111 {offsets = [0, 128], sizes = [8, 128], strides = [1, 1]} : vector<8x256xf32> to vector<8x128xf32>
    %122 = arith.addf %120, %121 : vector<8x128xf32>
    %123 = arith.negf %122 : vector<8x128xf32>
    %124 = math.exp %123 : vector<8x128xf32>
    %cst_37 = arith.constant 1.000000e+00 : f32
    %125 = vector.broadcast %cst_37 : f32 to vector<8x128xf32>
    %126 = arith.addf %125, %124 : vector<8x128xf32>
    %127 = arith.divf %125, %126 : vector<8x128xf32>
    %128 = arith.mulf %127, %103 : vector<8x128xf32>
    %129 = vector.extract_strided_slice %110 {offsets = [0, 256], sizes = [8, 128], strides = [1, 1]} : vector<8x384xf32> to vector<8x128xf32>
    %cst_38 = arith.constant dense<0.000000e+00> : vector<8x128xf32>
    %130 = tpu.matmul %128, %4, %cst_38 {dimension_numbers = #tpu.dot_dimension_numbers<[1], [0], [0], [1], [0, 0, 1, 1], [], []>} : vector<8x128xf32>, vector<128x128xf32>, vector<8x128xf32> -> vector<8x128xf32>
    %131 = arith.addf %129, %130 : vector<8x128xf32>
    %132 = math.tanh %131 : vector<8x128xf32>
    %cst_39 = arith.constant 1.000000e+00 : f32
    %133 = vector.broadcast %cst_39 : f32 to vector<8x128xf32>
    %134 = arith.subf %133, %119 : vector<8x128xf32>
    %135 = arith.mulf %134, %103 : vector<8x128xf32>
    %136 = arith.mulf %119, %132 : vector<8x128xf32>
    %137 = arith.addf %135, %136 : vector<8x128xf32>
    %138 = arith.index_cast %c3_i32 : i32 to index
    %c0_40 = arith.constant 0 : index
    %c0_41 = arith.constant 0 : index
    %139 = vector.load %arg5[%138, %c0_40, %c0_41] : memref<4x8x128xf32, #tpu.memory_space<vmem>>, vector<1x8x128xf32>
    %140 = vector.shape_cast %139 : vector<1x8x128xf32> to vector<8x128xf32>
    %141 = vector.shape_cast %137 : vector<8x128xf32> to vector<1x8x128xf32>
    tpu.vector_store %arg5[%138, %c0_40, %c0_41], %141 {strides = array<i32>} : memref<4x8x128xf32, #tpu.memory_space<vmem>>, vector<1x8x128xf32>,
    %c4_i32 = arith.constant 4 : i32
    %c0_42 = arith.constant 0 : index
    %c0_43 = arith.constant 0 : index
    %142 = vector.load %arg6[%c0_42, %c0_43] : memref<8x128xf32, #tpu.memory_space<vmem>>, vector<8x128xf32>
    tpu.vector_store %arg6[%c0_42, %c0_43], %137 {strides = array<i32>} : memref<8x128xf32, #tpu.memory_space<vmem>>, vector<8x128xf32>,
    return
  }
  func.func @transform_0(%arg0: i32) -> (i32, i32, i32) {
    %c0_i32 = arith.constant 0 : i32
    %c0_i32_0 = arith.constant 0 : i32
    %c0_i32_1 = arith.constant 0 : i32
    return %arg0, %c0_i32, %c0_i32_0 : i32, i32, i32
  }
  func.func @transform_1(%arg0: i32) -> (i32, i32) {
    %c0_i32 = arith.constant 0 : i32
    %c0_i32_0 = arith.constant 0 : i32
    %c0_i32_1 = arith.constant 0 : i32
    return %c0_i32, %c0_i32_0 : i32, i32
  }
  func.func @transform_2(%arg0: i32) -> (i32, i32) {
    %c0_i32 = arith.constant 0 : i32
    %c0_i32_0 = arith.constant 0 : i32
    %c0_i32_1 = arith.constant 0 : i32
    return %c0_i32, %c0_i32_0 : i32, i32
  }
  func.func @transform_3(%arg0: i32) -> (i32, i32) {
    %c0_i32 = arith.constant 0 : i32
    %c0_i32_0 = arith.constant 0 : i32
    %c0_i32_1 = arith.constant 0 : i32
    return %c0_i32, %c0_i32_0 : i32, i32
  }
  func.func @transform_4(%arg0: i32) -> (i32, i32, i32) {
    %c0_i32 = arith.constant 0 : i32
    %c0_i32_0 = arith.constant 0 : i32
    %c0_i32_1 = arith.constant 0 : i32
    return %arg0, %c0_i32, %c0_i32_0 : i32, i32, i32
  }
}

module attributes {stable_mosaic.version = 11 : i64} {
  func.func @vocab_projection_kernel(%arg0: i32, %arg1: i32, %arg2: memref<8x8x128xf32, #tpu.memory_space<vmem>>, %arg3: memref<128x128xf32, #tpu.memory_space<vmem>>, %arg4: memref<1x128xf32, #tpu.memory_space<vmem>>, %arg5: memref<8x8x128xf32, #tpu.memory_space<vmem>>) attributes {dimension_semantics = [#tpu.dimension_semantics<parallel>, #tpu.dimension_semantics<parallel>], iteration_bounds = array<i64: 1, 1>, scalar_prefetch = 0 : i64, scratch_operands = 0 : i64, tpu.core_type = #tpu.core_type<tc>, window_params = [{transform_indices = @transform_0, window_bounds = array<i64: 8, 8, 128>}, {transform_indices = @transform_1, window_bounds = array<i64: 128, 128>}, {transform_indices = @transform_2, window_bounds = array<i64: 1, 128>}, {transform_indices = @transform_3, window_bounds = array<i64: 8, 8, 128>}]} {
    %c0 = arith.constant 0 : index
    %c0_0 = arith.constant 0 : index
    %0 = vector.load %arg3[%c0, %c0_0] : memref<128x128xf32, #tpu.memory_space<vmem>>, vector<128x128xf32>
    %c0_1 = arith.constant 0 : index
    %c0_2 = arith.constant 0 : index
    %1 = vector.load %arg4[%c0_1, %c0_2] : memref<1x128xf32, #tpu.memory_space<vmem>>, vector<1x128xf32>
    %2 = vector.shape_cast %1 : vector<1x128xf32> to vector<1x128xf32>
    %3 = vector.broadcast %2 : vector<1x128xf32> to vector<8x128xf32>
    %c0_3 = arith.constant 0 : index
    %c0_4 = arith.constant 0 : index
    %c0_5 = arith.constant 0 : index
    %4 = vector.load %arg2[%c0_3, %c0_4, %c0_5] : memref<8x8x128xf32, #tpu.memory_space<vmem>>, vector<1x8x128xf32>
    %5 = vector.shape_cast %4 : vector<1x8x128xf32> to vector<8x128xf32>
    %cst = arith.constant dense<0.000000e+00> : vector<8x128xf32>
    %6 = tpu.matmul %5, %0, %cst {dimension_numbers = #tpu.dot_dimension_numbers<[1], [0], [0], [1], [0, 0, 1, 1], [], []>} : vector<8x128xf32>, vector<128x128xf32>, vector<8x128xf32> -> vector<8x128xf32>
    %7 = arith.addf %6, %3 : vector<8x128xf32>
    %c0_6 = arith.constant 0 : index
    %c0_7 = arith.constant 0 : index
    %c0_8 = arith.constant 0 : index
    %8 = vector.load %arg5[%c0_6, %c0_7, %c0_8] : memref<8x8x128xf32, #tpu.memory_space<vmem>>, vector<8x1x128xf32>
    %9 = vector.shape_cast %8 : vector<8x1x128xf32> to vector<8x128xf32>
    %10 = vector.shape_cast %7 : vector<8x128xf32> to vector<8x1x128xf32>
    tpu.vector_store %arg5[%c0_6, %c0_7, %c0_8], %10 {strides = array<i32>} : memref<8x8x128xf32, #tpu.memory_space<vmem>>, vector<8x1x128xf32>,
    %c1 = arith.constant 1 : index
    %c0_9 = arith.constant 0 : index
    %c0_10 = arith.constant 0 : index
    %11 = vector.load %arg2[%c1, %c0_9, %c0_10] : memref<8x8x128xf32, #tpu.memory_space<vmem>>, vector<1x8x128xf32>
    %12 = vector.shape_cast %11 : vector<1x8x128xf32> to vector<8x128xf32>
    %cst_11 = arith.constant dense<0.000000e+00> : vector<8x128xf32>
    %13 = tpu.matmul %12, %0, %cst_11 {dimension_numbers = #tpu.dot_dimension_numbers<[1], [0], [0], [1], [0, 0, 1, 1], [], []>} : vector<8x128xf32>, vector<128x128xf32>, vector<8x128xf32> -> vector<8x128xf32>
    %14 = arith.addf %13, %3 : vector<8x128xf32>
    %c0_12 = arith.constant 0 : index
    %c1_13 = arith.constant 1 : index
    %c0_14 = arith.constant 0 : index
    %15 = vector.load %arg5[%c0_12, %c1_13, %c0_14] : memref<8x8x128xf32, #tpu.memory_space<vmem>>, vector<8x1x128xf32>
    %16 = vector.shape_cast %15 : vector<8x1x128xf32> to vector<8x128xf32>
    %17 = vector.shape_cast %14 : vector<8x128xf32> to vector<8x1x128xf32>
    tpu.vector_store %arg5[%c0_12, %c1_13, %c0_14], %17 {strides = array<i32>} : memref<8x8x128xf32, #tpu.memory_space<vmem>>, vector<8x1x128xf32>,
    %c2 = arith.constant 2 : index
    %c0_15 = arith.constant 0 : index
    %c0_16 = arith.constant 0 : index
    %18 = vector.load %arg2[%c2, %c0_15, %c0_16] : memref<8x8x128xf32, #tpu.memory_space<vmem>>, vector<1x8x128xf32>
    %19 = vector.shape_cast %18 : vector<1x8x128xf32> to vector<8x128xf32>
    %cst_17 = arith.constant dense<0.000000e+00> : vector<8x128xf32>
    %20 = tpu.matmul %19, %0, %cst_17 {dimension_numbers = #tpu.dot_dimension_numbers<[1], [0], [0], [1], [0, 0, 1, 1], [], []>} : vector<8x128xf32>, vector<128x128xf32>, vector<8x128xf32> -> vector<8x128xf32>
    %21 = arith.addf %20, %3 : vector<8x128xf32>
    %c0_18 = arith.constant 0 : index
    %c2_19 = arith.constant 2 : index
    %c0_20 = arith.constant 0 : index
    %22 = vector.load %arg5[%c0_18, %c2_19, %c0_20] : memref<8x8x128xf32, #tpu.memory_space<vmem>>, vector<8x1x128xf32>
    %23 = vector.shape_cast %22 : vector<8x1x128xf32> to vector<8x128xf32>
    %24 = vector.shape_cast %21 : vector<8x128xf32> to vector<8x1x128xf32>
    tpu.vector_store %arg5[%c0_18, %c2_19, %c0_20], %24 {strides = array<i32>} : memref<8x8x128xf32, #tpu.memory_space<vmem>>, vector<8x1x128xf32>,
    %c3 = arith.constant 3 : index
    %c0_21 = arith.constant 0 : index
    %c0_22 = arith.constant 0 : index
    %25 = vector.load %arg2[%c3, %c0_21, %c0_22] : memref<8x8x128xf32, #tpu.memory_space<vmem>>, vector<1x8x128xf32>
    %26 = vector.shape_cast %25 : vector<1x8x128xf32> to vector<8x128xf32>
    %cst_23 = arith.constant dense<0.000000e+00> : vector<8x128xf32>
    %27 = tpu.matmul %26, %0, %cst_23 {dimension_numbers = #tpu.dot_dimension_numbers<[1], [0], [0], [1], [0, 0, 1, 1], [], []>} : vector<8x128xf32>, vector<128x128xf32>, vector<8x128xf32> -> vector<8x128xf32>
    %28 = arith.addf %27, %3 : vector<8x128xf32>
    %c0_24 = arith.constant 0 : index
    %c3_25 = arith.constant 3 : index
    %c0_26 = arith.constant 0 : index
    %29 = vector.load %arg5[%c0_24, %c3_25, %c0_26] : memref<8x8x128xf32, #tpu.memory_space<vmem>>, vector<8x1x128xf32>
    %30 = vector.shape_cast %29 : vector<8x1x128xf32> to vector<8x128xf32>
    %31 = vector.shape_cast %28 : vector<8x128xf32> to vector<8x1x128xf32>
    tpu.vector_store %arg5[%c0_24, %c3_25, %c0_26], %31 {strides = array<i32>} : memref<8x8x128xf32, #tpu.memory_space<vmem>>, vector<8x1x128xf32>,
    %c4 = arith.constant 4 : index
    %c0_27 = arith.constant 0 : index
    %c0_28 = arith.constant 0 : index
    %32 = vector.load %arg2[%c4, %c0_27, %c0_28] : memref<8x8x128xf32, #tpu.memory_space<vmem>>, vector<1x8x128xf32>
    %33 = vector.shape_cast %32 : vector<1x8x128xf32> to vector<8x128xf32>
    %cst_29 = arith.constant dense<0.000000e+00> : vector<8x128xf32>
    %34 = tpu.matmul %33, %0, %cst_29 {dimension_numbers = #tpu.dot_dimension_numbers<[1], [0], [0], [1], [0, 0, 1, 1], [], []>} : vector<8x128xf32>, vector<128x128xf32>, vector<8x128xf32> -> vector<8x128xf32>
    %35 = arith.addf %34, %3 : vector<8x128xf32>
    %c0_30 = arith.constant 0 : index
    %c4_31 = arith.constant 4 : index
    %c0_32 = arith.constant 0 : index
    %36 = vector.load %arg5[%c0_30, %c4_31, %c0_32] : memref<8x8x128xf32, #tpu.memory_space<vmem>>, vector<8x1x128xf32>
    %37 = vector.shape_cast %36 : vector<8x1x128xf32> to vector<8x128xf32>
    %38 = vector.shape_cast %35 : vector<8x128xf32> to vector<8x1x128xf32>
    tpu.vector_store %arg5[%c0_30, %c4_31, %c0_32], %38 {strides = array<i32>} : memref<8x8x128xf32, #tpu.memory_space<vmem>>, vector<8x1x128xf32>,
    %c5 = arith.constant 5 : index
    %c0_33 = arith.constant 0 : index
    %c0_34 = arith.constant 0 : index
    %39 = vector.load %arg2[%c5, %c0_33, %c0_34] : memref<8x8x128xf32, #tpu.memory_space<vmem>>, vector<1x8x128xf32>
    %40 = vector.shape_cast %39 : vector<1x8x128xf32> to vector<8x128xf32>
    %cst_35 = arith.constant dense<0.000000e+00> : vector<8x128xf32>
    %41 = tpu.matmul %40, %0, %cst_35 {dimension_numbers = #tpu.dot_dimension_numbers<[1], [0], [0], [1], [0, 0, 1, 1], [], []>} : vector<8x128xf32>, vector<128x128xf32>, vector<8x128xf32> -> vector<8x128xf32>
    %42 = arith.addf %41, %3 : vector<8x128xf32>
    %c0_36 = arith.constant 0 : index
    %c5_37 = arith.constant 5 : index
    %c0_38 = arith.constant 0 : index
    %43 = vector.load %arg5[%c0_36, %c5_37, %c0_38] : memref<8x8x128xf32, #tpu.memory_space<vmem>>, vector<8x1x128xf32>
    %44 = vector.shape_cast %43 : vector<8x1x128xf32> to vector<8x128xf32>
    %45 = vector.shape_cast %42 : vector<8x128xf32> to vector<8x1x128xf32>
    tpu.vector_store %arg5[%c0_36, %c5_37, %c0_38], %45 {strides = array<i32>} : memref<8x8x128xf32, #tpu.memory_space<vmem>>, vector<8x1x128xf32>,
    %c6 = arith.constant 6 : index
    %c0_39 = arith.constant 0 : index
    %c0_40 = arith.constant 0 : index
    %46 = vector.load %arg2[%c6, %c0_39, %c0_40] : memref<8x8x128xf32, #tpu.memory_space<vmem>>, vector<1x8x128xf32>
    %47 = vector.shape_cast %46 : vector<1x8x128xf32> to vector<8x128xf32>
    %cst_41 = arith.constant dense<0.000000e+00> : vector<8x128xf32>
    %48 = tpu.matmul %47, %0, %cst_41 {dimension_numbers = #tpu.dot_dimension_numbers<[1], [0], [0], [1], [0, 0, 1, 1], [], []>} : vector<8x128xf32>, vector<128x128xf32>, vector<8x128xf32> -> vector<8x128xf32>
    %49 = arith.addf %48, %3 : vector<8x128xf32>
    %c0_42 = arith.constant 0 : index
    %c6_43 = arith.constant 6 : index
    %c0_44 = arith.constant 0 : index
    %50 = vector.load %arg5[%c0_42, %c6_43, %c0_44] : memref<8x8x128xf32, #tpu.memory_space<vmem>>, vector<8x1x128xf32>
    %51 = vector.shape_cast %50 : vector<8x1x128xf32> to vector<8x128xf32>
    %52 = vector.shape_cast %49 : vector<8x128xf32> to vector<8x1x128xf32>
    tpu.vector_store %arg5[%c0_42, %c6_43, %c0_44], %52 {strides = array<i32>} : memref<8x8x128xf32, #tpu.memory_space<vmem>>, vector<8x1x128xf32>,
    %c7 = arith.constant 7 : index
    %c0_45 = arith.constant 0 : index
    %c0_46 = arith.constant 0 : index
    %53 = vector.load %arg2[%c7, %c0_45, %c0_46] : memref<8x8x128xf32, #tpu.memory_space<vmem>>, vector<1x8x128xf32>
    %54 = vector.shape_cast %53 : vector<1x8x128xf32> to vector<8x128xf32>
    %cst_47 = arith.constant dense<0.000000e+00> : vector<8x128xf32>
    %55 = tpu.matmul %54, %0, %cst_47 {dimension_numbers = #tpu.dot_dimension_numbers<[1], [0], [0], [1], [0, 0, 1, 1], [], []>} : vector<8x128xf32>, vector<128x128xf32>, vector<8x128xf32> -> vector<8x128xf32>
    %56 = arith.addf %55, %3 : vector<8x128xf32>
    %c0_48 = arith.constant 0 : index
    %c7_49 = arith.constant 7 : index
    %c0_50 = arith.constant 0 : index
    %57 = vector.load %arg5[%c0_48, %c7_49, %c0_50] : memref<8x8x128xf32, #tpu.memory_space<vmem>>, vector<8x1x128xf32>
    %58 = vector.shape_cast %57 : vector<8x1x128xf32> to vector<8x128xf32>
    %59 = vector.shape_cast %56 : vector<8x128xf32> to vector<8x1x128xf32>
    tpu.vector_store %arg5[%c0_48, %c7_49, %c0_50], %59 {strides = array<i32>} : memref<8x8x128xf32, #tpu.memory_space<vmem>>, vector<8x1x128xf32>,
    return
  }
  func.func @transform_0(%arg0: i32, %arg1: i32) -> (i32, i32, i32) {
    %c0_i32 = arith.constant 0 : i32
    %c0_i32_0 = arith.constant 0 : i32
    %c0_i32_1 = arith.constant 0 : i32
    return %arg0, %c0_i32, %c0_i32_0 : i32, i32, i32
  }
  func.func @transform_1(%arg0: i32, %arg1: i32) -> (i32, i32) {
    %c0_i32 = arith.constant 0 : i32
    %c0_i32_0 = arith.constant 0 : i32
    return %c0_i32, %arg1 : i32, i32
  }
  func.func @transform_2(%arg0: i32, %arg1: i32) -> (i32, i32) {
    %c0_i32 = arith.constant 0 : i32
    %c0_i32_0 = arith.constant 0 : i32
    return %c0_i32, %arg1 : i32, i32
  }
  func.func @transform_3(%arg0: i32, %arg1: i32) -> (i32, i32, i32) {
    %c0_i32 = arith.constant 0 : i32
    %c0_i32_0 = arith.constant 0 : i32
    return %c0_i32, %arg0, %arg1 : i32, i32, i32
  }
}

</mosaic_0001>

<bundles_post_ra>
// kernel: decoder_gru_forward.3
= control target key start
LH: loop header
LB: loop body
LE: loop exit
PB: predicated region body
PF: predicated region fallthrough
CT: control target
= control target key end

     0   :  { %v391_v3 = vmov 0.0   ;;  %vm51_vm0 = vcmask 261120   ;;  %v36_v27 = vlaneseq  ;;  %s583_s1 = inlined_call_operand.vmem [shape: f32[32,384], index: 1, kind: input, shape index: {}]   ;;  %s584_s0 = inlined_call_operand.vmem [shape: f32[64,32], index: 0, kind: input, shape index: {}]   ;;  %s585_s2 = inlined_call_operand.vmem [shape: f32[1,384], index: 2, kind: input, shape index: {}]   ;;  %s586_s3 = inlined_call_operand.vmem [shape: f32[64,384], index: 3, kind: output, shape index: {}]  }
   0x1   :  { %v23_v0 = vld [vmem:[%s583_s1 + $0x8] sm:$0xff]  ;;  %v26_v1 = vld [vmem:[%s583_s1 + $0x20] sm:$0xff]  ;;  %140 = vmatprep.mubr.f32.mxu0 %v391_v3  ;;  %176 = vmatprep.mubr.f32.mxu1 %v391_v3  ;;  %v25_v5 = vld [vmem:[%s583_s1 + $0x18] sm:$0xff] }
   0x2   :  { %v22_v2 = vld [vmem:[%s583_s1] sm:$0xff]  ;;  %v370_v4 = vpack.c.bf16 %v26_v1, %v23_v0  ;;  %v29_v6 = vld [vmem:[%s583_s1 + $0x38] sm:$0xff]  ;;  %v32_v7 = vld [vmem:[%s583_s1 + $0x50] sm:$0xff]  ;;  %v37_v28 = vshrl.u32 %v36_v27, 7 }
   0x3   :  { %v372_v8 = vpack.c.bf16 %v25_v5, %v22_v2  ;;  %v374_v9 = vpack.c.bf16 %v32_v7, %v29_v6  ;;  %v28_v10 = vld [vmem:[%s583_s1 + $0x30] sm:$0xff]  ;;  %v31_v11 = vld [vmem:[%s583_s1 + $0x48] sm:$0xff]  ;;  %v30_v16 = vld [vmem:[%s583_s1 + $0x40] sm:$0xff] }
   0x4   :  { %371 = vmatprep.subr.bf16.mxu0 %v370_v4  ;;  %386 = vmatprep.subr.bf16.mxu1 %v370_v4  ;;  %v24_v12 = vld [vmem:[%s583_s1 + $0x10] sm:$0xff]  ;;  %v27_v13 = vld [vmem:[%s583_s1 + $0x28] sm:$0xff]  ;;  %v376_v14 = vpack.c.bf16 %v31_v11, %v28_v10  ;;  %v33_v17 = vld [vmem:[%s583_s1 + $0x58] sm:$0xff]  ;;  %v38_v29 = vsub.s32 0, %v37_v28  ;;  %v42_v31 = vsub.s32 1, %v37_v28  ;;  %v46_v40 = vsub.s32 2, %v37_v28 }
   0x5   :  { %373 = vmatpush1.bf16.msra.mxu0 %v372_v8  ;;  %388 = vmatpush1.bf16.msra.mxu1 %v372_v8  ;;  %v378_v15 = vpack.c.bf16 %v27_v13, %v24_v12  ;;  %v14_v18 = vld [vmem:[%s584_s0] sm:$0xff]  ;;  %v20_v19 = vld [vmem:[%s584_s0 + $0x30] sm:$0xff]  ;;  %v382_v20 = vpack.c.bf16 %v33_v17, %v30_v16  ;;  %v15_v21 = vld [vmem:[%s584_s0 + $0x8] sm:$0xff] }
   0x6   :  { %375 = vmatprep.subr.bf16.mxu0 %v374_v9  ;;  %387 = vmatprep.subr.bf16.mxu1 %v374_v9  ;;  %v21_v22 = vld [vmem:[%s584_s0 + $0x38] sm:$0xff]  ;;  %v16_v23 = vld [vmem:[%s584_s0 + $0x10] sm:$0xff]  ;;  %v18_v25 = vld [vmem:[%s584_s0 + $0x20] sm:$0xff] }
   0x7   :  { %v17_v24 = vld [vmem:[%s584_s0 + $0x18] sm:$0xff]  ;;  %v19_v26 = vld [vmem:[%s584_s0 + $0x28] sm:$0xff]  ;;  %v34_v30 = vld [vmem:[%s585_s2] sm:$0x7] }
   0x8   :  { %v491_v32 = vrot.slane %v34_v30, %v38_v29  ;;  %v493_v33 = vrot.slane %v34_v30, %v42_v31  ;;  %v47_v49 = vrot.slane %v34_v30, %v46_v40 }
   0x9   :  { %377 = vmatpush1.bf16.msra.mxu0 %v376_v14  ;;  %389 = vmatpush1.bf16.msra.mxu1 %v376_v14 }
   0xa   :  { %379 = vmatprep.subr.bf16.mxu1 %v378_v15 }
   0xc   :  { %322 = vmatmul.mubr.msk.f32.vlgmr.msra.gmra.mrb[0].mxu0 %vm51_vm0, %v14_v18  ;;  %328 = vmatmul.mubr.msk.f32.vlgmr.msra.gmra.mrb[0].mxu1 %vm51_vm0, %v20_v19 }
   0xd   :  { %381 = vmatpush3.bf16.msra.mxu1 %v378_v15  ;;  %146 = vmatprep.mubr.f32.mxu0 %v391_v3 }
   0xe   :  { %182 = vmatprep.mubr.f32.mxu1 %v391_v3  ;;  %383 = vmatprep.subr.bf16.mxu1 %v382_v20 }
  0x10   :  { %323 = vmatmul.mubr.msk.f32.gmra.mrb[2].mxu0 %vm51_vm0, %v15_v21  ;;  %329 = vmatmul.mubr.msk.f32.gmra.mrb[2].mxu1 %vm51_vm0, %v21_v22 }
  0x11   :  { %385 = vmatpush3.bf16.msra.mxu1 %v382_v20  ;;  %152 = vmatprep.mubr.f32.mxu0 %v391_v3 }
  0x12   :  { %358 = vmatprep.mubr.msk.f32.mxu1 %vm51_vm0, %v14_v18 }
  0x14   :  { %324 = vmatmul.mubr.msk.f32.gmra.mrb[4].mxu0 %vm51_vm0, %v16_v23  ;;  %359 = vmatmul.mubr.msk.f32.vlgmr.msra.gmra.mrb[4].mxu1 %vm51_vm0, %v15_v21 }
  0x15   :  { %158 = vmatprep.mubr.f32.mxu0 %v391_v3  ;;  %361 = vmatprep.mubr.msk.f32.mxu1 %vm51_vm0, %v16_v23 }
  0x18   :  { %325 = vmatmul.mubr.msk.f32.gmra.mrb[6].mxu0 %vm51_vm0, %v17_v24  ;;  %362 = vmatmul.mubr.msk.f32.gmra.mrb[6].mxu1 %vm51_vm0, %v17_v24 }
  0x19   :  { %164 = vmatprep.mubr.f32.mxu0 %v391_v3  ;;  %364 = vmatprep.mubr.msk.f32.mxu1 %vm51_vm0, %v18_v25 }
  0x1c   :  { %326 = vmatmul.mubr.msk.f32.gmra.mrb[8].mxu0 %vm51_vm0, %v18_v25  ;;  %365 = vmatmul.mubr.msk.f32.gmra.mrb[8].mxu1 %vm51_vm0, %v19_v26 }
  0x1d   :  { %170 = vmatprep.mubr.f32.mxu0 %v391_v3  ;;  %367 = vmatprep.mubr.msk.f32.mxu1 %vm51_vm0, %v20_v19 }
  0x20   :  { %327 = vmatmul.mubr.msk.f32.gmra.mrb[10].mxu0 %vm51_vm0, %v19_v26  ;;  %368 = vmatmul.mubr.msk.f32.gmra.mrb[10].mxu1 %vm51_vm0, %v21_v22 }
  0xdf   :  { %v142_v34 = vpop.f32.mrb[0].mxu0  ;;  %v178_v35 = vpop.f32.mrb[0].mxu1 }
  0xe0   :  { %v143_v36 = vadd.f32 %v142_v34, %v491_v32  ;;  %v179_v37 = vadd.f32 %v178_v35, %v491_v32  ;;  %v144_v38 = vpop.f32.mrb[1].mxu0  ;;  %v180_v39 = vpop.f32.mrb[1].mxu1 }
  0xe1   :  { %v145_v41 = vadd.f32 %v144_v38, %v493_v33  ;;  %v181_v42 = vadd.f32 %v180_v39, %v493_v33 }
  0xe2   :  { %294 = vst [vmem:[%s586_s3] sm:$0xff] %v143_v36  ;;  %312 = vst [vmem:[%s586_s3 + $0x90] sm:$0xff] %v179_v37 }
  0xe3   :  { %295 = vst [vmem:[%s586_s3 + $0x8] sm:$0xff] %v145_v41  ;;  %313 = vst [vmem:[%s586_s3 + $0x98] sm:$0xff] %v181_v42  ;;  %v148_v43 = vpop.f32.mrb[2].mxu0  ;;  %v184_v44 = vpop.f32.mrb[2].mxu1 }
  0xe4   :  { %v149_v45 = vadd.f32 %v148_v43, %v491_v32  ;;  %v185_v46 = vadd.f32 %v184_v44, %v491_v32  ;;  %v150_v47 = vpop.f32.mrb[3].mxu0  ;;  %v186_v48 = vpop.f32.mrb[3].mxu1 }
  0xe5   :  { %v151_v50 = vadd.f32 %v150_v47, %v493_v33  ;;  %v187_v51 = vadd.f32 %v186_v48, %v493_v33 }
  0xe6   :  { %297 = vst [vmem:[%s586_s3 + $0x18] sm:$0xff] %v149_v45  ;;  %315 = vst [vmem:[%s586_s3 + $0xa8] sm:$0xff] %v185_v46 }
  0xe7   :  { %298 = vst [vmem:[%s586_s3 + $0x20] sm:$0xff] %v151_v50  ;;  %316 = vst [vmem:[%s586_s3 + $0xb0] sm:$0xff] %v187_v51  ;;  %v154_v52 = vpop.f32.mrb[4].mxu0  ;;  %v360_v53 = vpop.f32.mrb[4].mxu1 }
  0xe8   :  { %v155_v54 = vadd.f32 %v154_v52, %v491_v32  ;;  %v261_v55 = vadd.f32 %v360_v53, %v47_v49  ;;  %v156_v56 = vpop.f32.mrb[5].mxu0  ;;  %v255_v57 = vpop.f32.mrb[5].mxu1 }
  0xe9   :  { %v157_v58 = vadd.f32 %v156_v56, %v493_v33  ;;  %v256_v59 = vadd.f32 %v255_v57, %v47_v49 }
  0xea   :  { %300 = vst [vmem:[%s586_s3 + $0x30] sm:$0xff] %v155_v54  ;;  %299 = vst [vmem:[%s586_s3 + $0x28] sm:$0xff] %v261_v55 }
  0xeb   :  { %301 = vst [vmem:[%s586_s3 + $0x38] sm:$0xff] %v157_v58  ;;  %296 = vst [vmem:[%s586_s3 + $0x10] sm:$0xff] %v256_v59  ;;  %v160_v60 = vpop.f32.mrb[6].mxu0  ;;  %v363_v61 = vpop.f32.mrb[6].mxu1 }
  0xec   :  { %v161_v62 = vadd.f32 %v160_v60, %v491_v32  ;;  %v271_v63 = vadd.f32 %v363_v61, %v47_v49  ;;  %v162_v0 = vpop.f32.mrb[7].mxu0  ;;  %v265_v1 = vpop.f32.mrb[7].mxu1 }
  0xed   :  { %v163_v2 = vadd.f32 %v162_v0, %v493_v33  ;;  %v266_v3 = vadd.f32 %v265_v1, %v47_v49 }
  0xee   :  { %303 = vst [vmem:[%s586_s3 + $0x48] sm:$0xff] %v161_v62  ;;  %305 = vst [vmem:[%s586_s3 + $0x58] sm:$0xff] %v271_v63 }
  0xef   :  { %304 = vst [vmem:[%s586_s3 + $0x50] sm:$0xff] %v163_v2  ;;  %302 = vst [vmem:[%s586_s3 + $0x40] sm:$0xff] %v266_v3  ;;  %v166_v4 = vpop.f32.mrb[8].mxu0  ;;  %v366_v5 = vpop.f32.mrb[8].mxu1 }
  0xf0   :  { %v167_v6 = vadd.f32 %v166_v4, %v491_v32  ;;  %v281_v7 = vadd.f32 %v366_v5, %v47_v49  ;;  %v168_v8 = vpop.f32.mrb[9].mxu0  ;;  %v275_v9 = vpop.f32.mrb[9].mxu1 }
  0xf1   :  { %v169_v10 = vadd.f32 %v168_v8, %v493_v33  ;;  %v276_v11 = vadd.f32 %v275_v9, %v47_v49 }
  0xf2   :  { %306 = vst [vmem:[%s586_s3 + $0x60] sm:$0xff] %v167_v6  ;;  %311 = vst [vmem:[%s586_s3 + $0x88] sm:$0xff] %v281_v7 }
  0xf3   :  { %307 = vst [vmem:[%s586_s3 + $0x68] sm:$0xff] %v169_v10  ;;  %308 = vst [vmem:[%s586_s3 + $0x70] sm:$0xff] %v276_v11  ;;  %v172_v12 = vpop.f32.mrb[10].mxu0  ;;  %v369_v13 = vpop.f32.mrb[10].mxu1 }
  0xf4   :  { %v173_v14 = vadd.f32 %v172_v12, %v491_v32  ;;  %v291_v15 = vadd.f32 %v369_v13, %v47_v49  ;;  %v174_v16 = vpop.f32.mrb[11].mxu0  ;;  %v285_v17 = vpop.f32.mrb[11].mxu1 }
  0xf5   :  { %v175_v18 = vadd.f32 %v174_v16, %v493_v33  ;;  %v286_v19 = vadd.f32 %v285_v17, %v47_v49 }
  0xf6   :  { %309 = vst [vmem:[%s586_s3 + $0x78] sm:$0xff] %v173_v14  ;;  %317 = vst [vmem:[%s586_s3 + $0xb8] sm:$0xff] %v291_v15 }
  0xf7   :  { %310 = vst [vmem:[%s586_s3 + $0x80] sm:$0xff] %v175_v18  ;;  %314 = vst [vmem:[%s586_s3 + $0xa0] sm:$0xff] %v286_v19 }

// kernel: decoder_gru_forward.4
= control target key start
LH: loop header
LB: loop body
LE: loop exit
PB: predicated region body
PF: predicated region fallthrough
CT: control target
= control target key end

     0   :  { %s1538_s15 = smov 0   ;;  %s1921_s0 = inlined_call_operand.vmem [shape: f32[8,8,384], index: 0, kind: input, shape index: {}]   ;;  %s1922_s1 = inlined_call_operand.vmem [shape: f32[8,128], index: 1, kind: input, shape index: {}]   ;;  %s1923_s2 = inlined_call_operand.vmem [shape: f32[128,256], index: 2, kind: input, shape index: {}]   ;;  %s1924_s3 = inlined_call_operand.vmem [shape: f32[128,128], index: 3, kind: input, shape index: {}]   ;;  %s1925_s4 = inlined_call_operand.vmem [shape: f32[8,8,128], index: 4, kind: output, shape index: {}]  }
   0x1 LB: > { %s986_s16 = sadd.s32 4294967295, %s1508_s15   ;;  %p990_p0 = scmp.ge.s32.totalorder %s1508_s15, 1  ;;  %s1508_s15 = sphi %s1538_s15, %s14_s15  }
   0x2   : > { %p164_p1 = scmp.lt.s32.totalorder %s1508_s15, 3 }
   0x4   : > { %p165_p2 = pnand %p990_p0, %p164_p1 }
   0x5   : > { %s991_s17 = sshll.u32 (!%p165_p2), %s986_s16, 2  ;;  %p995_p4 = scmp.ne.s32.totalorder (!%p165_p2), %s986_s16, 0 }
   0x6   : > { %168 = sbr.rel (%p165_p2) target bundleno = 1944 (0x798), region = 36  ;;  %p192_p3 = scmp.lt.s32.totalorder (!%p165_p2), %s991_s17, 7 }
   0xd   : > { %s1927_s17 = smov (!%p192_p3, %s991_s17), 7  ;;  %207 = sbr.rel (%p995_p4) target bundleno = 20 (0x14), region = 40 }
   0xe   : > { %s1450_s18 = smul.u32 24, %s1927_s17  ;;  %s994_s19 = sshll.u32 %s1927_s17, 3  ;;  %v208_v0 = vld [vmem:[%s1922_s1] sm:$0xff] (!%p995_p4) }
   0xf   : > { %s1549_s22 = scalar_lea.vmem %s1925_s4, %s994_s19  ;;  %209 = vst [vmem:[#allocation2] sm:$0xff] (!%p995_p4), %v208_v0 }
  0x10   : > { %s1554_s25 = scalar_lea.vmem %s1921_s0, %s1450_s18 }
  0x14 PF: > { %v211_v1 = vld [vmem:[%s1923_s2 + $0x8] sm:$0xff]  ;;  %v213_v2 = vld [vmem:[%s1923_s2 + $0x18] sm:$0xff]  ;;  %v210_v3 = vld [vmem:[%s1923_s2] sm:$0xff]  ;;  %v1510_v8 = vmov 0.0   ;;  %v1511_v54 = vmov 0.0|0.0   ;;  %vm1512_vm0 = vmmov 0  }
  0x15   : > { %v1568_v4 = vpack.c.bf16 %v213_v2, %v211_v1  ;;  %v212_v5 = vld [vmem:[%s1923_s2 + $0x10] sm:$0xff]  ;;  %v215_v6 = vld [vmem:[%s1923_s2 + $0x28] sm:$0xff]  ;;  %v217_v7 = vld [vmem:[%s1923_s2 + $0x38] sm:$0xff]  ;;  %326 = vmatprep.mubr.f32.mxu0 %v1510_v8  ;;  %1258 = vmatprep.subr.bf16.mxu1 %v1511_v54 }
  0x16   : > { %v1580_v9 = vpack.c.bf16 %v212_v5, %v210_v3  ;;  %v1582_v10 = vpack.c.bf16 %v217_v7, %v215_v6  ;;  %v214_v11 = vld [vmem:[%s1923_s2 + $0x20] sm:$0xff]  ;;  %v216_v12 = vld [vmem:[%s1923_s2 + $0x30] sm:$0xff]  ;;  %v219_v13 = vld [vmem:[%s1923_s2 + $0x48] sm:$0xff]  ;;  %1118 = vmatprep.mubr.msk.f32.mxu1 %vm1512_vm0, %v1510_v8 }
  0x17   : > { %1227 = vmatprep.subr.bf16.mxu0 %v1568_v4  ;;  %v221_v14 = vld [vmem:[%s1923_s2 + $0x58] sm:$0xff]  ;;  %v1598_v15 = vpack.c.bf16 %v216_v12, %v214_v11  ;;  %v218_v17 = vld [vmem:[%s1923_s2 + $0x40] sm:$0xff]  ;;  %v220_v18 = vld [vmem:[%s1923_s2 + $0x50] sm:$0xff] }
  0x18   : > { %1229 = vmatpush1.bf16.msra.mxu0 %v1580_v9  ;;  %v1601_v16 = vpack.c.bf16 %v221_v14, %v219_v13  ;;  %v223_v19 = vld [vmem:[%s1923_s2 + $0x68] sm:$0xff]  ;;  %v225_v20 = vld [vmem:[%s1923_s2 + $0x78] sm:$0xff]  ;;  %v1616_v21 = vpack.c.bf16 %v220_v18, %v218_v17  ;;  %v222_v23 = vld [vmem:[%s1923_s2 + $0x60] sm:$0xff] }
  0x19   : > { %1231 = vmatprep.subr.bf16.mxu0 %v1582_v10  ;;  %v1619_v22 = vpack.c.bf16 %v225_v20, %v223_v19  ;;  %v224_v24 = vld [vmem:[%s1923_s2 + $0x70] sm:$0xff]  ;;  %v227_v25 = vld [vmem:[%s1923_s2 + $0x88] sm:$0xff]  ;;  %v229_v26 = vld [vmem:[%s1923_s2 + $0x98] sm:$0xff] }
  0x1a   : > { %v1634_v27 = vpack.c.bf16 %v224_v24, %v222_v23  ;;  %v1637_v28 = vpack.c.bf16 %v229_v26, %v227_v25  ;;  %v226_v29 = vld [vmem:[%s1923_s2 + $0x80] sm:$0xff]  ;;  %v228_v30 = vld [vmem:[%s1923_s2 + $0x90] sm:$0xff]  ;;  %v231_v31 = vld [vmem:[%s1923_s2 + $0xa8] sm:$0xff] }
  0x1b   : > { %v233_v32 = vld [vmem:[%s1923_s2 + $0xb8] sm:$0xff]  ;;  %v1652_v33 = vpack.c.bf16 %v228_v30, %v226_v29  ;;  %v230_v35 = vld [vmem:[%s1923_s2 + $0xa0] sm:$0xff]  ;;  %v232_v36 = vld [vmem:[%s1923_s2 + $0xb0] sm:$0xff] }
  0x1c   : > { %1233 = vmatpush1.bf16.msra.mxu0 %v1598_v15  ;;  %v1655_v34 = vpack.c.bf16 %v233_v32, %v231_v31  ;;  %v235_v37 = vld [vmem:[%s1923_s2 + $0xc8] sm:$0xff]  ;;  %v237_v38 = vld [vmem:[%s1923_s2 + $0xd8] sm:$0xff]  ;;  %v1670_v39 = vpack.c.bf16 %v232_v36, %v230_v35  ;;  %v234_v41 = vld [vmem:[%s1923_s2 + $0xc0] sm:$0xff] }
  0x1d   : > { %1235 = vmatprep.subr.bf16.mxu0 %v1601_v16  ;;  %v1673_v40 = vpack.c.bf16 %v237_v38, %v235_v37  ;;  %v236_v42 = vld [vmem:[%s1923_s2 + $0xd0] sm:$0xff]  ;;  %v239_v43 = vld [vmem:[%s1923_s2 + $0xe8] sm:$0xff]  ;;  %v241_v44 = vld [vmem:[%s1923_s2 + $0xf8] sm:$0xff] }
  0x1e   : > { %v1688_v45 = vpack.c.bf16 %v236_v42, %v234_v41  ;;  %v1691_v46 = vpack.c.bf16 %v241_v44, %v239_v43  ;;  %v238_v47 = vld [vmem:[%s1923_s2 + $0xe0] sm:$0xff]  ;;  %v240_v48 = vld [vmem:[%s1923_s2 + $0xf0] sm:$0xff]  ;;  %v243_v52 = vld [vmem:[%s1924_s3 + $0x8] sm:$0xff] }
  0x1f   : > { %v1700_v49 = vpack.c.bf16 %v240_v48, %v238_v47  ;;  %v1704_v50 = vld [vmem:[#allocation2] sm:$0xff]  ;;  %v244_v55 = vld [vmem:[%s1924_s3 + $0x10] sm:$0xff]  ;;  %v245_v56 = vld [vmem:[%s1924_s3 + $0x18] sm:$0xff] }
  0x20   : > { %1237 = vmatpush1.bf16.msra.mxu0 %v1616_v21  ;;  %v242_v51 = vld [vmem:[%s1924_s3] sm:$0xff]  ;;  %v1742_v57 = vpack.c.bf16 %v245_v56, %v244_v55  ;;  %v247_v59 = vld [vmem:[%s1924_s3 + $0x28] sm:$0xff]  ;;  %v248_v61 = vld [vmem:[%s1924_s3 + $0x30] sm:$0xff] }
  0x21   : > { %1239 = vmatprep.subr.bf16.mxu0 %v1619_v22  ;;  %v1731_v53 = vpack.c.bf16 %v243_v52, %v242_v51  ;;  %v246_v58 = vld [vmem:[%s1924_s3 + $0x20] sm:$0xff]  ;;  %v249_v62 = vld [vmem:[%s1924_s3 + $0x38] sm:$0xff]  ;;  %v251_v1 = vld [vmem:[%s1924_s3 + $0x48] sm:$0xff] }
  0x22   : > { %v1752_v60 = vpack.c.bf16 %v247_v59, %v246_v58  ;;  %v1762_v63 = vpack.c.bf16 %v249_v62, %v248_v61  ;;  %v250_v0 = vld [vmem:[%s1924_s3 + $0x40] sm:$0xff]  ;;  %v252_v3 = vld [vmem:[%s1924_s3 + $0x50] sm:$0xff]  ;;  %v253_v5 = vld [vmem:[%s1924_s3 + $0x58] sm:$0xff] }
  0x23   : > { %1260 = vmatpush3.bf16.msra.mxu1 %v1731_v53  ;;  %v1772_v2 = vpack.c.bf16 %v251_v1, %v250_v0  ;;  %v1782_v6 = vpack.c.bf16 %v253_v5, %v252_v3  ;;  %v254_v7 = vld [vmem:[%s1924_s3 + $0x60] sm:$0xff]  ;;  %v255_v11 = vld [vmem:[%s1924_s3 + $0x68] sm:$0xff]  ;;  %v256_v13 = vld [vmem:[%s1924_s3 + $0x70] sm:$0xff] }
  0x24   : > { %1241 = vmatpush1.bf16.msra.mxu0 %v1634_v27  ;;  %1261 = vmatprep.subr.bf16.mxu1 %v1511_v54  ;;  %v1793_v12 = vpack.c.bf16 %v255_v11, %v254_v7  ;;  %v257_v14 = vld [vmem:[%s1924_s3 + $0x78] sm:$0xff]  ;;  %v260_v18 = vld [vmem:[%s1554_s25 + $0x8] sm:$0xff]  ;;  %v259_v31 = vld [vmem:[%s1554_s25] sm:$0xff] }
  0x25   : > { %1243 = vmatprep.subr.bf16.mxu0 %v1637_v28  ;;  %v1803_v17 = vpack.c.bf16 %v257_v14, %v256_v13  ;;  %v261_v38 = vld [vmem:[%s1554_s25 + $0x10] sm:$0xff]  ;;  %v1000_v14 = vld [vmem:[%s1554_s25 + $0x28] sm:$0xff] }
  0x27   : > { %1263 = vmatpush3.bf16.msra.mxu1 %v1742_v57 }
  0x28   : > { %1245 = vmatpush1.bf16.msra.mxu0 %v1652_v33  ;;  %1264 = vmatprep.subr.bf16.mxu1 %v1511_v54 }
  0x29   : > { %1247 = vmatprep.subr.bf16.mxu0 %v1655_v34 }
  0x2b   : > { %1266 = vmatpush3.bf16.msra.mxu1 %v1752_v60 }
  0x2c   : > { %1249 = vmatpush1.bf16.msra.mxu0 %v1670_v39  ;;  %1267 = vmatprep.subr.bf16.mxu1 %v1511_v54 }
  0x2d   : > { %1251 = vmatprep.subr.bf16.mxu0 %v1673_v40 }
  0x2f   : > { %1269 = vmatpush3.bf16.msra.mxu1 %v1762_v63 }
  0x30   : > { %1253 = vmatpush1.bf16.msra.mxu0 %v1688_v45  ;;  %1270 = vmatprep.subr.bf16.mxu1 %v1511_v54 }
  0x31   : > { %1255 = vmatprep.subr.bf16.mxu0 %v1691_v46 }
  0x33   : > { %1272 = vmatpush3.bf16.msra.mxu1 %v1772_v2 }
  0x34   : > { %1257 = vmatpush1.bf16.msra.mxu0 %v1700_v49  ;;  %1273 = vmatprep.subr.bf16.mxu1 %v1511_v54 }
  0x35   : > { %1283 = vmatprep.subr.bf16.mxu0 %v1568_v4 }
  0x37   : > { %327 = vmatmul.mubr.f32.vlgmr.msra.gmra.mrb[0].mxu0 %v1704_v50  ;;  %1275 = vmatpush3.bf16.msra.mxu1 %v1782_v6 }
  0x38   : > { %1285 = vmatpush1.bf16.msra.mxu0 %v1580_v9  ;;  %493 = vmatprep.mubr.f32.mxu0 %v1510_v8 }
  0x39   : > { %1287 = vmatprep.subr.bf16.mxu0 %v1582_v10  ;;  %1276 = vmatprep.subr.bf16.mxu1 %v1511_v54 }
  0x3b   : > { %1278 = vmatpush3.bf16.msra.mxu1 %v1793_v12 }
  0x3c   : > { %1289 = vmatpush1.bf16.msra.mxu0 %v1598_v15  ;;  %1279 = vmatprep.subr.bf16.mxu1 %v1511_v54 }
  0x3d   : > { %1291 = vmatprep.subr.bf16.mxu0 %v1601_v16 }
  0x3f   : > { %1281 = vmatpush3.bf16.msra.mxu1 %v1803_v17 }
  0x40   : > { %1293 = vmatpush1.bf16.msra.mxu0 %v1616_v21  ;;  %1314 = vmatprep.subr.bf16.mxu1 %v1511_v54 }
  0x41   : > { %1295 = vmatprep.subr.bf16.mxu0 %v1619_v22 }
  0x44   : > { %1297 = vmatpush1.bf16.msra.mxu0 %v1634_v27 }
  0x45   : > { %1299 = vmatprep.subr.bf16.mxu0 %v1637_v28 }
  0x48   : > { %1301 = vmatpush1.bf16.msra.mxu0 %v1652_v33 }
  0x49   : > { %1303 = vmatprep.subr.bf16.mxu0 %v1655_v34 }
  0x4c   : > { %1305 = vmatpush1.bf16.msra.mxu0 %v1670_v39 }
  0x4d   : > { %1307 = vmatprep.subr.bf16.mxu0 %v1673_v40 }
  0x50   : > { %1309 = vmatpush1.bf16.msra.mxu0 %v1688_v45 }
  0x51   : > { %1311 = vmatprep.subr.bf16.mxu0 %v1691_v46 }
  0x54   : > { %1313 = vmatpush1.bf16.msra.mxu0 %v1700_v49 }
  0x55   : > { %1339 = vmatprep.subr.bf16.mxu0 %v1568_v4 }
 0x10a   : > { %v328_v19 = vpop.f32.mrb[0].mxu0 }
 0x10b   : > { %v330_v20 = vpop.f32.mrb[1].mxu0  ;;  %v333_v32 = vadd.f32 %v328_v19, %v259_v31 }
 0x10c   : > { %v340_v23 = vadd.f32 %v330_v20, %v260_v18 }
 0x10d   : > { %v996_v35 = vmul.f32 -1.442695, %v333_v32 }
 0x10e   : > { %v997_v24 = vmul.f32 -1.442695, %v340_v23 }
 0x110   : > { %1462 = vpow2.f32 %v997_v24 }
 0x11a   : > { %v1463_v25 = vpop.eup %1462 }
 0x11b   : > { %v344_v26 = vadd.f32 1.0, %v1463_v25 }
 0x11d   : > { %1464 = vrcp.f32 %v344_v26 }
 0x11e   : > { %1466 = vpow2.f32 %v996_v35 }
 0x127   : > { %v1465_v29 = vpop.eup %1464 }
 0x128   : > { %v347_v30 = vmul.f32 %v1465_v29, %v1704_v50  ;;  %v1467_v36 = vpop.eup %1466 }
 0x129   : > { %v337_v37 = vadd.f32 1.0, %v1467_v36 }
 0x12a   : > { %1119 = vmatmul.mubr.f32.vlgmr.msra.gmra.mrb[0].mxu1 %v347_v30 }
 0x12b   : > { %1316 = vmatpush3.bf16.msra.mxu1 %v1731_v53  ;;  %1153 = vmatprep.mubr.msk.f32.mxu1 %vm1512_vm0, %v1510_v8  ;;  %1468 = vrcp.f32 %v337_v37 }
 0x12c   : > { %1317 = vmatprep.subr.bf16.mxu1 %v1511_v54 }
 0x12f   : > { %1319 = vmatpush3.bf16.msra.mxu1 %v1742_v57 }
 0x130   : > { %1320 = vmatprep.subr.bf16.mxu1 %v1511_v54 }
 0x133   : > { %1322 = vmatpush3.bf16.msra.mxu1 %v1752_v60 }
 0x134   : > { %1323 = vmatprep.subr.bf16.mxu1 %v1511_v54 }
 0x135   : > { %v1469_v44 = vpop.eup %1468 }
 0x136   : > { %v420_v47 = vsub.f32 1.0, %v1469_v44 }
 0x137   : > { %1325 = vmatpush3.bf16.msra.mxu1 %v1762_v63 }
 0x138   : > { %1326 = vmatprep.subr.bf16.mxu1 %v1511_v54  ;;  %v421_v51 = vmul.f32 %v420_v47, %v1704_v50  ;;  %v999_v50 = vld [vmem:[%s1554_s25 + $0x20] sm:$0xff] }
 0x13b   : > { %1328 = vmatpush3.bf16.msra.mxu1 %v1772_v2 }
 0x13c   : > { %1329 = vmatprep.subr.bf16.mxu1 %v1511_v54 }
 0x13f   : > { %1331 = vmatpush3.bf16.msra.mxu1 %v1782_v6 }
 0x140   : > { %1332 = vmatprep.subr.bf16.mxu1 %v1511_v54 }
 0x143   : > { %1334 = vmatpush3.bf16.msra.mxu1 %v1793_v12 }
 0x144   : > { %1335 = vmatprep.subr.bf16.mxu1 %v1511_v54 }
 0x147   : > { %1337 = vmatpush3.bf16.msra.mxu1 %v1803_v17 }
 0x148   : > { %1370 = vmatprep.subr.bf16.mxu1 %v1511_v54 }
 0x1fd   : > { %v414_v41 = vpop.f32.mrb[0].mxu1 }
 0x1fe   : > { %v418_v42 = vadd.f32 %v414_v41, %v261_v38  ;;  %v1120_v43 = vpop.f32.mrb[1].mxu1 }
 0x1ff   : > { %v1010_v43 = vld [vmem:[%s1554_s25 + $0x48] sm:$0xff] }
 0x200   : > { %1470 = vtanh.f32 %v418_v42 }
 0x20a   : > { %v1471_v48 = vpop.eup %1470 }
 0x20b   : > { %v422_v52 = vmul.f32 %v1471_v48, %v1469_v44 }
 0x20d   : > { %v1831_v55 = vadd.f32 %v422_v52, %v421_v51  ;;  %v1012_v52 = vld [vmem:[%s1554_s25 + $0x58] sm:$0xff] }
 0x20f   : > { %424 = vst [vmem:[%s1549_s22] sm:$0xff] %v1831_v55  ;;  %494 = vmatmul.mubr.f32.vlgmr.msra.gmra.mrb[2].mxu0 %v1831_v55 }
 0x210   : > { %1341 = vmatpush1.bf16.msra.mxu0 %v1580_v9  ;;  %661 = vmatprep.mubr.f32.mxu0 %v1510_v8 }
 0x211   : > { %1343 = vmatprep.subr.bf16.mxu0 %v1582_v10 }
 0x214   : > { %1345 = vmatpush1.bf16.msra.mxu0 %v1598_v15 }
 0x215   : > { %1347 = vmatprep.subr.bf16.mxu0 %v1601_v16 }
 0x218   : > { %1349 = vmatpush1.bf16.msra.mxu0 %v1616_v21 }
 0x219   : > { %1351 = vmatprep.subr.bf16.mxu0 %v1619_v22 }
 0x21c   : > { %1353 = vmatpush1.bf16.msra.mxu0 %v1634_v27 }
 0x21d   : > { %1355 = vmatprep.subr.bf16.mxu0 %v1637_v28 }
 0x220   : > { %1357 = vmatpush1.bf16.msra.mxu0 %v1652_v33 }
 0x221   : > { %1359 = vmatprep.subr.bf16.mxu0 %v1655_v34 }
 0x224   : > { %1361 = vmatpush1.bf16.msra.mxu0 %v1670_v39 }
 0x225   : > { %1363 = vmatprep.subr.bf16.mxu0 %v1673_v40 }
 0x228   : > { %1365 = vmatpush1.bf16.msra.mxu0 %v1688_v45 }
 0x229   : > { %1367 = vmatprep.subr.bf16.mxu0 %v1691_v46 }
 0x22c   : > { %1369 = vmatpush1.bf16.msra.mxu0 %v1700_v49 }
 0x22d   : > { %1395 = vmatprep.subr.bf16.mxu0 %v1568_v4  ;;  %v998_v4 = vld [vmem:[%s1554_s25 + $0x18] sm:$0xff] }
 0x2e2   : > { %v495_v56 = vpop.f32.mrb[2].mxu0 }
 0x2e3   : > { %v497_v58 = vpop.f32.mrb[3].mxu0  ;;  %v500_v5 = vadd.f32 %v998_v4, %v495_v56 }
 0x2e4   : > { %v507_v59 = vadd.f32 %v999_v50, %v497_v58 }
 0x2e5   : > { %v1001_v7 = vmul.f32 -1.442695, %v500_v5 }
 0x2e6   : > { %v1002_v61 = vmul.f32 -1.442695, %v507_v59 }
 0x2e8   : > { %1472 = vpow2.f32 %v1002_v61 }
 0x2f2   : > { %v1473_v62 = vpop.eup %1472 }
 0x2f3   : > { %v511_v0 = vadd.f32 1.0, %v1473_v62 }
 0x2f5   : > { %1474 = vrcp.f32 %v511_v0 }
 0x2f6   : > { %1476 = vpow2.f32 %v1001_v7 }
 0x2ff   : > { %v1475_v1 = vpop.eup %1474 }
 0x300   : > { %v514_v3 = vmul.f32 %v1475_v1, %v1831_v55  ;;  %v1477_v11 = vpop.eup %1476 }
 0x301   : > { %v504_v13 = vadd.f32 1.0, %v1477_v11 }
 0x302   : > { %1154 = vmatmul.mubr.f32.vlgmr.msra.gmra.mrb[2].mxu1 %v514_v3 }
 0x303   : > { %1372 = vmatpush3.bf16.msra.mxu1 %v1731_v53  ;;  %1188 = vmatprep.mubr.msk.f32.mxu1 %vm1512_vm0, %v1510_v8  ;;  %1478 = vrcp.f32 %v504_v13 }
 0x304   : > { %1373 = vmatprep.subr.bf16.mxu1 %v1511_v54 }
 0x307   : > { %1375 = vmatpush3.bf16.msra.mxu1 %v1742_v57 }
 0x308   : > { %1376 = vmatprep.subr.bf16.mxu1 %v1511_v54 }
 0x30b   : > { %1378 = vmatpush3.bf16.msra.mxu1 %v1752_v60 }
 0x30c   : > { %1379 = vmatprep.subr.bf16.mxu1 %v1511_v54 }
 0x30d   : > { %v1479_v23 = vpop.eup %1478 }
 0x30e   : > { %v587_v24 = vsub.f32 1.0, %v1479_v23 }
 0x30f   : > { %1381 = vmatpush3.bf16.msra.mxu1 %v1762_v63 }
 0x310   : > { %1382 = vmatprep.subr.bf16.mxu1 %v1511_v54  ;;  %v588_v26 = vmul.f32 %v587_v24, %v1831_v55 }
 0x313   : > { %1384 = vmatpush3.bf16.msra.mxu1 %v1772_v2 }
 0x314   : > { %1385 = vmatprep.subr.bf16.mxu1 %v1511_v54 }
 0x317   : > { %1387 = vmatpush3.bf16.msra.mxu1 %v1782_v6 }
 0x318   : > { %1388 = vmatprep.subr.bf16.mxu1 %v1511_v54 }
 0x31b   : > { %1390 = vmatpush3.bf16.msra.mxu1 %v1793_v12 }
 0x31c   : > { %1391 = vmatprep.subr.bf16.mxu1 %v1511_v54 }
 0x31f   : > { %1393 = vmatpush3.bf16.msra.mxu1 %v1803_v17 }
 0x320   : > { %1426 = vmatprep.subr.bf16.mxu1 %v1511_v54 }
 0x3d5   : > { %v581_v18 = vpop.f32.mrb[2].mxu1 }
 0x3d6   : > { %v585_v19 = vadd.f32 %v1000_v14, %v581_v18  ;;  %v1155_v20 = vpop.f32.mrb[3].mxu1 }
 0x3d8   : > { %1480 = vtanh.f32 %v585_v19 }
 0x3e2   : > { %v1481_v25 = vpop.eup %1480 }
 0x3e3   : > { %v589_v29 = vmul.f32 %v1481_v25, %v1479_v23 }
 0x3e5   : > { %v590_v30 = vadd.f32 %v589_v29, %v588_v26 }
 0x3e7   : > { %1003 = vst [vmem:[%s1549_s22 + $0x8] sm:$0xff] %v590_v30  ;;  %662 = vmatmul.mubr.f32.vlgmr.msra.gmra.mrb[4].mxu0 %v590_v30 }
 0x3e8   : > { %1397 = vmatpush1.bf16.msra.mxu0 %v1580_v9  ;;  %829 = vmatprep.mubr.f32.mxu0 %v1510_v8  ;;  %v1005_v9 = vld [vmem:[%s1554_s25 + $0x38] sm:$0xff] }
 0x3e9   : > { %1399 = vmatprep.subr.bf16.mxu0 %v1582_v10 }
 0x3ec   : > { %1401 = vmatpush1.bf16.msra.mxu0 %v1598_v15 }
 0x3ed   : > { %1403 = vmatprep.subr.bf16.mxu0 %v1601_v16 }
 0x3f0   : > { %1405 = vmatpush1.bf16.msra.mxu0 %v1616_v21 }
 0x3f1   : > { %1407 = vmatprep.subr.bf16.mxu0 %v1619_v22 }
 0x3f4   : > { %1409 = vmatpush1.bf16.msra.mxu0 %v1634_v27 }
 0x3f5   : > { %1411 = vmatprep.subr.bf16.mxu0 %v1637_v28 }
 0x3f8   : > { %1413 = vmatpush1.bf16.msra.mxu0 %v1652_v33 }
 0x3f9   : > { %1415 = vmatprep.subr.bf16.mxu0 %v1655_v34 }
 0x3fc   : > { %1417 = vmatpush1.bf16.msra.mxu0 %v1670_v39 }
 0x3fd   : > { %1419 = vmatprep.subr.bf16.mxu0 %v1673_v40 }
 0x400   : > { %1421 = vmatpush1.bf16.msra.mxu0 %v1688_v45 }
 0x401   : > { %1423 = vmatprep.subr.bf16.mxu0 %v1691_v46  ;;  %v1006_v46 = vld [vmem:[%s1554_s25 + $0x40] sm:$0xff] }
 0x404   : > { %1425 = vmatpush1.bf16.msra.mxu0 %v1700_v49 }
 0x4ba   : > { %v663_v10 = vpop.f32.mrb[4].mxu0 }
 0x4bb   : > { %v665_v15 = vpop.f32.mrb[5].mxu0 }
 0x4bc   : > { %v675_v16 = vadd.f32 %v1005_v9, %v665_v15 }
 0x4be   : > { %v1008_v21 = vmul.f32 -1.442695, %v675_v16 }
 0x4c0   : > { %1482 = vpow2.f32 %v1008_v21 }
 0x4ca   : > { %v1483_v22 = vpop.eup %1482 }
 0x4cb   : > { %v679_v27 = vadd.f32 1.0, %v1483_v22 }
 0x4cd   : > { %1484 = vrcp.f32 %v679_v27 }
 0x4d7   : > { %v1485_v28 = vpop.eup %1484 }
 0x4d8   : > { %v682_v33 = vmul.f32 %v1485_v28, %v590_v30 }
 0x4da   : > { %1189 = vmatmul.mubr.f32.vlgmr.msra.gmra.mrb[4].mxu1 %v682_v33 }
 0x4db   : > { %1428 = vmatpush3.bf16.msra.mxu1 %v1731_v53  ;;  %1223 = vmatprep.mubr.msk.f32.mxu1 %vm1512_vm0, %v1510_v8  ;;  %v1004_v8 = vld [vmem:[%s1554_s25 + $0x30] sm:$0xff] }
 0x4dc   : > { %1429 = vmatprep.subr.bf16.mxu1 %v1511_v54  ;;  %v668_v34 = vadd.f32 %v1004_v8, %v663_v10 }
 0x4de   : > { %v1007_v39 = vmul.f32 -1.442695, %v668_v34 }
 0x4df   : > { %1431 = vmatpush3.bf16.msra.mxu1 %v1742_v57 }
 0x4e0   : > { %1432 = vmatprep.subr.bf16.mxu1 %v1511_v54  ;;  %1486 = vpow2.f32 %v1007_v39 }
 0x4e3   : > { %1434 = vmatpush3.bf16.msra.mxu1 %v1752_v60 }
 0x4e4   : > { %1435 = vmatprep.subr.bf16.mxu1 %v1511_v54 }
 0x4e7   : > { %1437 = vmatpush3.bf16.msra.mxu1 %v1762_v63 }
 0x4e8   : > { %1438 = vmatprep.subr.bf16.mxu1 %v1511_v54 }
 0x4ea   : > { %v1487_v40 = vpop.eup %1486 }
 0x4eb   : > { %1440 = vmatpush3.bf16.msra.mxu1 %v1772_v2  ;;  %v672_v45 = vadd.f32 1.0, %v1487_v40 }
 0x4ec   : > { %1441 = vmatprep.subr.bf16.mxu1 %v1511_v54 }
 0x4ed   : > { %1488 = vrcp.f32 %v672_v45 }
 0x4ef   : > { %1443 = vmatpush3.bf16.msra.mxu1 %v1782_v6 }
 0x4f0   : > { %1444 = vmatprep.subr.bf16.mxu1 %v1511_v54 }
 0x4f3   : > { %1446 = vmatpush3.bf16.msra.mxu1 %v1793_v12 }
 0x4f4   : > { %1447 = vmatprep.subr.bf16.mxu1 %v1511_v54 }
 0x4f7   : > { %1449 = vmatpush3.bf16.msra.mxu1 %v1803_v17  ;;  %v1489_v60 = vpop.eup %1488  ;;  %v1011_v17 = vld [vmem:[%s1554_s25 + $0x50] sm:$0xff] }
 0x4f8   : > { %v755_v63 = vsub.f32 1.0, %v1489_v60 }
 0x4fa   : > { %v756_v54 = vmul.f32 %v755_v63, %v590_v30 }
 0x5ad   : > { %v749_v49 = vpop.f32.mrb[4].mxu1 }
 0x5ae   : > { %v753_v53 = vadd.f32 %v1006_v46, %v749_v49  ;;  %v1190_v57 = vpop.f32.mrb[5].mxu1 }
 0x5b0   : > { %1490 = vtanh.f32 %v753_v53 }
 0x5ba   : > { %v1491_v2 = vpop.eup %1490 }
 0x5bb   : > { %v757_v6 = vmul.f32 %v1491_v2, %v1489_v60 }
 0x5bd   : > { %v758_v12 = vadd.f32 %v757_v6, %v756_v54 }
 0x5bf   : > { %1009 = vst [vmem:[%s1549_s22 + $0x10] sm:$0xff] %v758_v12  ;;  %830 = vmatmul.mubr.f32.vlgmr.msra.gmra.mrb[6].mxu0 %v758_v12 }
 0x692   : > { %v831_v31 = vpop.f32.mrb[6].mxu0 }
 0x693   : > { %v833_v32 = vpop.f32.mrb[7].mxu0  ;;  %v836_v44 = vadd.f32 %v1010_v43, %v831_v31 }
 0x694   : > { %v843_v35 = vadd.f32 %v1011_v17, %v833_v32 }
 0x695   : > { %v1013_v47 = vmul.f32 -1.442695, %v836_v44 }
 0x696   : > { %v1014_v36 = vmul.f32 -1.442695, %v843_v35 }
 0x698   : > { %1492 = vpow2.f32 %v1014_v36 }
 0x6a2   : > { %v1493_v37 = vpop.eup %1492 }
 0x6a3   : > { %v847_v38 = vadd.f32 1.0, %v1493_v37 }
 0x6a5   : > { %1494 = vrcp.f32 %v847_v38 }
 0x6a6   : > { %1496 = vpow2.f32 %v1013_v47 }
 0x6af   : > { %v1495_v41 = vpop.eup %1494 }
 0x6b0   : > { %v850_v42 = vmul.f32 %v1495_v41, %v758_v12  ;;  %v1497_v48 = vpop.eup %1496 }
 0x6b1   : > { %v840_v51 = vadd.f32 1.0, %v1497_v48 }
 0x6b2   : > { %1224 = vmatmul.mubr.f32.vlgmr.msra.gmra.mrb[6].mxu1 %v850_v42 }
 0x6b3   : > { %1498 = vrcp.f32 %v840_v51 }
 0x6bd   : > { %v1499_v58 = vpop.eup %1498 }
 0x6be   : > { %v923_v59 = vsub.f32 1.0, %v1499_v58 }
 0x6c0   : > { %v924_v62 = vmul.f32 %v923_v59, %v758_v12 }
 0x785   : > { %v917_v55 = vpop.f32.mrb[6].mxu1 }
 0x786   : > { %v921_v50 = vadd.f32 %v1012_v52, %v917_v55  ;;  %v1225_v56 = vpop.f32.mrb[7].mxu1 }
 0x788   : > { %1500 = vtanh.f32 %v921_v50 }
 0x792   : > { %v1501_v61 = vpop.eup %1500 }
 0x793   : > { %v925_v0 = vmul.f32 %v1501_v61, %v1499_v58 }
 0x795   : > { %v926_v1 = vadd.f32 %v925_v0, %v924_v62 }
 0x797   : > { %1015 = vst [vmem:[%s1549_s22 + $0x18] sm:$0xff] %v926_v1  ;;  %929 = vst [vmem:[#allocation2] sm:$0xff] %v926_v1 }
 0x798 PF: > { %s14_s15 = sadd.s32 1, %s1508_s15  }
 0x799   : > { %p11_p5 = scmp.ge.s32.totalorder %s14_s15, 4  }
 0x79b   :  { %13 = sbr.rel (!%p11_p5) target bundleno = 1 (0x1), region = 76 }

// kernel: decoder_gru_forward.5
= control target key start
LH: loop header
LB: loop body
LE: loop exit
PB: predicated region body
PF: predicated region fallthrough
CT: control target
= control target key end

     0   :  { %v1796_v0 = vmov 0.0|0.0   ;;  %vm1797_vm0 = vmmov 0   ;;  %v1798_v6 = vmov 0.0   ;;  %v1799_v34 = vmov 1966171168   ;;  %s2307_s1 = inlined_call_operand.vmem [shape: f32[128,128], index: 1, kind: input, shape index: {}]   ;;  %s2308_s0 = inlined_call_operand.vmem [shape: f32[8,8,128], index: 0, kind: input, shape index: {}]   ;;  %s2309_s2 = inlined_call_operand.vmem [shape: f32[1,128], index: 2, kind: input, shape index: {}]   ;;  %s2310_s3 = inlined_call_operand.vmem [shape: f32[8,8,128], index: 3, kind: output, shape index: {}]  }
   0x1   :  { %1600 = vmatprep.subr.bf16.mxu0 %v1796_v0  ;;  %1624 = vmatprep.subr.bf16.mxu1 %v1796_v0  ;;  %v14_v1 = vld [vmem:[%s2307_s1] sm:$0xff]  ;;  %v15_v2 = vld [vmem:[%s2307_s1 + $0x8] sm:$0xff]  ;;  %v16_v3 = vld [vmem:[%s2307_s1 + $0x10] sm:$0xff]  ;;  %v111_v35 = vunpack.c.l.s4 %v1799_v34  ;;  %v113_v36 = vlaneseq }
   0x2   :  { %v1831_v4 = vpack.c.bf16 %v15_v2, %v14_v1  ;;  %v17_v5 = vld [vmem:[%s2307_s1 + $0x18] sm:$0xff]  ;;  %1352 = vmatprep.mubr.msk.f32.mxu0 %vm1797_vm0, %v1798_v6  ;;  %1387 = vmatprep.mubr.msk.f32.mxu1 %vm1797_vm0, %v1798_v6  ;;  %v18_v8 = vld [vmem:[%s2307_s1 + $0x20] sm:$0xff]  ;;  %v19_v9 = vld [vmem:[%s2307_s1 + $0x28] sm:$0xff] }
   0x3   :  { %v1842_v7 = vpack.c.bf16 %v17_v5, %v16_v3  ;;  %v1854_v10 = vpack.c.bf16 %v19_v9, %v18_v8  ;;  %v20_v11 = vld [vmem:[%s2307_s1 + $0x30] sm:$0xff]  ;;  %v21_v12 = vld [vmem:[%s2307_s1 + $0x38] sm:$0xff]  ;;  %v22_v14 = vld [vmem:[%s2307_s1 + $0x40] sm:$0xff]  ;;  %v112_v37 = vunpack.c.0.s8 %v111_v35  ;;  %v114_v38 = vshrl.u32 %v113_v36, 7 }
   0x4   :  { %1602 = vmatpush3.bf16.msra.mxu0 %v1831_v4  ;;  %1626 = vmatpush3.bf16.msra.mxu1 %v1831_v4  ;;  %v1866_v13 = vpack.c.bf16 %v21_v12, %v20_v11  ;;  %v23_v15 = vld [vmem:[%s2307_s1 + $0x48] sm:$0xff]  ;;  %v24_v17 = vld [vmem:[%s2307_s1 + $0x50] sm:$0xff]  ;;  %v25_v18 = vld [vmem:[%s2307_s1 + $0x58] sm:$0xff] }
   0x5   :  { %1603 = vmatprep.subr.bf16.mxu0 %v1796_v0  ;;  %1627 = vmatprep.subr.bf16.mxu1 %v1796_v0  ;;  %v1878_v16 = vpack.c.bf16 %v23_v15, %v22_v14  ;;  %v1890_v19 = vpack.c.bf16 %v25_v18, %v24_v17  ;;  %v26_v20 = vld [vmem:[%s2307_s1 + $0x60] sm:$0xff]  ;;  %v27_v21 = vld [vmem:[%s2307_s1 + $0x68] sm:$0xff]  ;;  %v28_v23 = vld [vmem:[%s2307_s1 + $0x70] sm:$0xff]  ;;  %v2057_v40 = vsub.s32 %v112_v37, %v114_v38 }
   0x6   :  { %v1902_v22 = vpack.c.bf16 %v27_v21, %v26_v20  ;;  %v29_v24 = vld [vmem:[%s2307_s1 + $0x78] sm:$0xff]  ;;  %v37_v26 = vld [vmem:[%s2308_s0] sm:$0xff]  ;;  %v1149_v27 = vld [vmem:[%s2308_s0 + $0x8] sm:$0xff] }
   0x7   :  { %v1914_v25 = vpack.c.bf16 %v29_v24, %v28_v23  ;;  %v1154_v28 = vld [vmem:[%s2308_s0 + $0x10] sm:$0xff]  ;;  %v1159_v29 = vld [vmem:[%s2308_s0 + $0x18] sm:$0xff]  ;;  %v1164_v30 = vld [vmem:[%s2308_s0 + $0x20] sm:$0xff] }
   0x8   :  { %1605 = vmatpush3.bf16.msra.mxu0 %v1842_v7  ;;  %1629 = vmatpush3.bf16.msra.mxu1 %v1842_v7  ;;  %v1169_v31 = vld [vmem:[%s2308_s0 + $0x28] sm:$0xff]  ;;  %v1174_v32 = vld [vmem:[%s2308_s0 + $0x30] sm:$0xff]  ;;  %v1179_v33 = vld [vmem:[%s2308_s0 + $0x38] sm:$0xff] }
   0x9   :  { %1606 = vmatprep.subr.bf16.mxu0 %v1796_v0  ;;  %1630 = vmatprep.subr.bf16.mxu1 %v1796_v0  ;;  %v2055_v39 = vld [vmem:[%s2309_s2] ss:$0 sm:$0xff] }
   0xc   :  { %1608 = vmatpush3.bf16.msra.mxu0 %v1854_v10  ;;  %1632 = vmatpush3.bf16.msra.mxu1 %v1854_v10 }
   0xd   :  { %1609 = vmatprep.subr.bf16.mxu0 %v1796_v0  ;;  %1633 = vmatprep.subr.bf16.mxu1 %v1796_v0 }
  0x10   :  { %1611 = vmatpush3.bf16.msra.mxu0 %v1866_v13  ;;  %1635 = vmatpush3.bf16.msra.mxu1 %v1866_v13 }
  0x11   :  { %1612 = vmatprep.subr.bf16.mxu0 %v1796_v0  ;;  %1636 = vmatprep.subr.bf16.mxu1 %v1796_v0 }
  0x14   :  { %1614 = vmatpush3.bf16.msra.mxu0 %v1878_v16  ;;  %1638 = vmatpush3.bf16.msra.mxu1 %v1878_v16 }
  0x15   :  { %1615 = vmatprep.subr.bf16.mxu0 %v1796_v0  ;;  %1639 = vmatprep.subr.bf16.mxu1 %v1796_v0 }
  0x18   :  { %1617 = vmatpush3.bf16.msra.mxu0 %v1890_v19  ;;  %1641 = vmatpush3.bf16.msra.mxu1 %v1890_v19 }
  0x19   :  { %1618 = vmatprep.subr.bf16.mxu0 %v1796_v0  ;;  %1642 = vmatprep.subr.bf16.mxu1 %v1796_v0 }
  0x1c   :  { %1620 = vmatpush3.bf16.msra.mxu0 %v1902_v22  ;;  %1644 = vmatpush3.bf16.msra.mxu1 %v1902_v22 }
  0x1d   :  { %1621 = vmatprep.subr.bf16.mxu0 %v1796_v0  ;;  %1645 = vmatprep.subr.bf16.mxu1 %v1796_v0 }
  0x20   :  { %1623 = vmatpush3.bf16.msra.mxu0 %v1914_v25  ;;  %1647 = vmatpush3.bf16.msra.mxu1 %v1914_v25 }
  0x21   :  { %1648 = vmatprep.subr.bf16.mxu0 %v1796_v0  ;;  %1672 = vmatprep.subr.bf16.mxu1 %v1796_v0 }
  0x23   :  { %1353 = vmatmul.mubr.f32.vlgmr.msra.gmra.mrb[0].mxu0 %v37_v26  ;;  %1388 = vmatmul.mubr.f32.vlgmr.msra.gmra.mrb[0].mxu1 %v1149_v27 }
  0x24   :  { %1650 = vmatpush3.bf16.msra.mxu0 %v1831_v4  ;;  %1674 = vmatpush3.bf16.msra.mxu1 %v1831_v4 }
  0x25   :  { %1651 = vmatprep.subr.bf16.mxu0 %v1796_v0  ;;  %1675 = vmatprep.subr.bf16.mxu1 %v1796_v0 }
  0x26   :  { %1422 = vmatprep.mubr.msk.f32.mxu0 %vm1797_vm0, %v1798_v6  ;;  %1457 = vmatprep.mubr.msk.f32.mxu1 %vm1797_vm0, %v1798_v6 }
  0x28   :  { %1653 = vmatpush3.bf16.msra.mxu0 %v1842_v7  ;;  %1677 = vmatpush3.bf16.msra.mxu1 %v1842_v7 }
  0x29   :  { %1654 = vmatprep.subr.bf16.mxu0 %v1796_v0  ;;  %1678 = vmatprep.subr.bf16.mxu1 %v1796_v0 }
  0x2c   :  { %1656 = vmatpush3.bf16.msra.mxu0 %v1854_v10  ;;  %1680 = vmatpush3.bf16.msra.mxu1 %v1854_v10 }
  0x2d   :  { %1657 = vmatprep.subr.bf16.mxu0 %v1796_v0  ;;  %1681 = vmatprep.subr.bf16.mxu1 %v1796_v0 }
  0x30   :  { %1659 = vmatpush3.bf16.msra.mxu0 %v1866_v13  ;;  %1683 = vmatpush3.bf16.msra.mxu1 %v1866_v13 }
  0x31   :  { %1660 = vmatprep.subr.bf16.mxu0 %v1796_v0  ;;  %1684 = vmatprep.subr.bf16.mxu1 %v1796_v0 }
  0x34   :  { %1662 = vmatpush3.bf16.msra.mxu0 %v1878_v16  ;;  %1686 = vmatpush3.bf16.msra.mxu1 %v1878_v16 }
  0x35   :  { %1663 = vmatprep.subr.bf16.mxu0 %v1796_v0  ;;  %1687 = vmatprep.subr.bf16.mxu1 %v1796_v0 }
  0x38   :  { %1665 = vmatpush3.bf16.msra.mxu0 %v1890_v19  ;;  %1689 = vmatpush3.bf16.msra.mxu1 %v1890_v19 }
  0x39   :  { %1666 = vmatprep.subr.bf16.mxu0 %v1796_v0  ;;  %1690 = vmatprep.subr.bf16.mxu1 %v1796_v0 }
  0x3c   :  { %1668 = vmatpush3.bf16.msra.mxu0 %v1902_v22  ;;  %1692 = vmatpush3.bf16.msra.mxu1 %v1902_v22 }
  0x3d   :  { %1669 = vmatprep.subr.bf16.mxu0 %v1796_v0  ;;  %1693 = vmatprep.subr.bf16.mxu1 %v1796_v0 }
  0x40   :  { %1671 = vmatpush3.bf16.msra.mxu0 %v1914_v25  ;;  %1695 = vmatpush3.bf16.msra.mxu1 %v1914_v25 }
  0x41   :  { %1696 = vmatprep.subr.bf16.mxu0 %v1796_v0  ;;  %1720 = vmatprep.subr.bf16.mxu1 %v1796_v0 }
  0x43   :  { %1423 = vmatmul.mubr.f32.vlgmr.msra.gmra.mrb[2].mxu0 %v1154_v28  ;;  %1458 = vmatmul.mubr.f32.vlgmr.msra.gmra.mrb[2].mxu1 %v1159_v29 }
  0x44   :  { %1698 = vmatpush3.bf16.msra.mxu0 %v1831_v4  ;;  %1722 = vmatpush3.bf16.msra.mxu1 %v1831_v4 }
  0x45   :  { %1699 = vmatprep.subr.bf16.mxu0 %v1796_v0  ;;  %1723 = vmatprep.subr.bf16.mxu1 %v1796_v0 }
  0x46   :  { %1492 = vmatprep.mubr.msk.f32.mxu0 %vm1797_vm0, %v1798_v6  ;;  %1527 = vmatprep.mubr.msk.f32.mxu1 %vm1797_vm0, %v1798_v6 }
  0x48   :  { %1701 = vmatpush3.bf16.msra.mxu0 %v1842_v7  ;;  %1725 = vmatpush3.bf16.msra.mxu1 %v1842_v7 }
  0x49   :  { %1702 = vmatprep.subr.bf16.mxu0 %v1796_v0  ;;  %1726 = vmatprep.subr.bf16.mxu1 %v1796_v0 }
  0x4c   :  { %1704 = vmatpush3.bf16.msra.mxu0 %v1854_v10  ;;  %1728 = vmatpush3.bf16.msra.mxu1 %v1854_v10 }
  0x4d   :  { %1705 = vmatprep.subr.bf16.mxu0 %v1796_v0  ;;  %1729 = vmatprep.subr.bf16.mxu1 %v1796_v0 }
  0x50   :  { %1707 = vmatpush3.bf16.msra.mxu0 %v1866_v13  ;;  %1731 = vmatpush3.bf16.msra.mxu1 %v1866_v13 }
  0x51   :  { %1708 = vmatprep.subr.bf16.mxu0 %v1796_v0  ;;  %1732 = vmatprep.subr.bf16.mxu1 %v1796_v0 }
  0x54   :  { %1710 = vmatpush3.bf16.msra.mxu0 %v1878_v16  ;;  %1734 = vmatpush3.bf16.msra.mxu1 %v1878_v16 }
  0x55   :  { %1711 = vmatprep.subr.bf16.mxu0 %v1796_v0  ;;  %1735 = vmatprep.subr.bf16.mxu1 %v1796_v0 }
  0x58   :  { %1713 = vmatpush3.bf16.msra.mxu0 %v1890_v19  ;;  %1737 = vmatpush3.bf16.msra.mxu1 %v1890_v19 }
  0x59   :  { %1714 = vmatprep.subr.bf16.mxu0 %v1796_v0  ;;  %1738 = vmatprep.subr.bf16.mxu1 %v1796_v0 }
  0x5c   :  { %1716 = vmatpush3.bf16.msra.mxu0 %v1902_v22  ;;  %1740 = vmatpush3.bf16.msra.mxu1 %v1902_v22 }
  0x5d   :  { %1717 = vmatprep.subr.bf16.mxu0 %v1796_v0  ;;  %1741 = vmatprep.subr.bf16.mxu1 %v1796_v0 }
  0x60   :  { %1719 = vmatpush3.bf16.msra.mxu0 %v1914_v25  ;;  %1743 = vmatpush3.bf16.msra.mxu1 %v1914_v25 }
  0x61   :  { %1744 = vmatprep.subr.bf16.mxu0 %v1796_v0  ;;  %1768 = vmatprep.subr.bf16.mxu1 %v1796_v0 }
  0x63   :  { %1493 = vmatmul.mubr.f32.vlgmr.msra.gmra.mrb[4].mxu0 %v1164_v30  ;;  %1528 = vmatmul.mubr.f32.vlgmr.msra.gmra.mrb[4].mxu1 %v1169_v31 }
  0x64   :  { %1746 = vmatpush3.bf16.msra.mxu0 %v1831_v4  ;;  %1770 = vmatpush3.bf16.msra.mxu1 %v1831_v4 }
  0x65   :  { %1747 = vmatprep.subr.bf16.mxu0 %v1796_v0  ;;  %1771 = vmatprep.subr.bf16.mxu1 %v1796_v0 }
  0x66   :  { %1562 = vmatprep.mubr.msk.f32.mxu0 %vm1797_vm0, %v1798_v6  ;;  %1597 = vmatprep.mubr.msk.f32.mxu1 %vm1797_vm0, %v1798_v6 }
  0x68   :  { %1749 = vmatpush3.bf16.msra.mxu0 %v1842_v7  ;;  %1773 = vmatpush3.bf16.msra.mxu1 %v1842_v7 }
  0x69   :  { %1750 = vmatprep.subr.bf16.mxu0 %v1796_v0  ;;  %1774 = vmatprep.subr.bf16.mxu1 %v1796_v0 }
  0x6c   :  { %1752 = vmatpush3.bf16.msra.mxu0 %v1854_v10  ;;  %1776 = vmatpush3.bf16.msra.mxu1 %v1854_v10 }
  0x6d   :  { %1753 = vmatprep.subr.bf16.mxu0 %v1796_v0  ;;  %1777 = vmatprep.subr.bf16.mxu1 %v1796_v0 }
  0x70   :  { %1755 = vmatpush3.bf16.msra.mxu0 %v1866_v13  ;;  %1779 = vmatpush3.bf16.msra.mxu1 %v1866_v13 }
  0x71   :  { %1756 = vmatprep.subr.bf16.mxu0 %v1796_v0  ;;  %1780 = vmatprep.subr.bf16.mxu1 %v1796_v0 }
  0x74   :  { %1758 = vmatpush3.bf16.msra.mxu0 %v1878_v16  ;;  %1782 = vmatpush3.bf16.msra.mxu1 %v1878_v16 }
  0x75   :  { %1759 = vmatprep.subr.bf16.mxu0 %v1796_v0  ;;  %1783 = vmatprep.subr.bf16.mxu1 %v1796_v0 }
  0x78   :  { %1761 = vmatpush3.bf16.msra.mxu0 %v1890_v19  ;;  %1785 = vmatpush3.bf16.msra.mxu1 %v1890_v19 }
  0x79   :  { %1762 = vmatprep.subr.bf16.mxu0 %v1796_v0  ;;  %1786 = vmatprep.subr.bf16.mxu1 %v1796_v0 }
  0x7c   :  { %1764 = vmatpush3.bf16.msra.mxu0 %v1902_v22  ;;  %1788 = vmatpush3.bf16.msra.mxu1 %v1902_v22 }
  0x7d   :  { %1765 = vmatprep.subr.bf16.mxu0 %v1796_v0  ;;  %1789 = vmatprep.subr.bf16.mxu1 %v1796_v0 }
  0x80   :  { %1767 = vmatpush3.bf16.msra.mxu0 %v1914_v25  ;;  %1791 = vmatpush3.bf16.msra.mxu1 %v1914_v25 }
  0x83   :  { %1563 = vmatmul.mubr.f32.vlgmr.msra.gmra.mrb[6].mxu0 %v1174_v32  ;;  %1598 = vmatmul.mubr.f32.vlgmr.msra.gmra.mrb[6].mxu1 %v1179_v33 }
  0xf6   :  { %v104_v41 = vpop.f32.mrb[0].mxu0  ;;  %v242_v42 = vpop.f32.mrb[0].mxu1 }
  0xf7   :  { %v105_v43 = vadd.f32 %v2055_v39, %v104_v41  ;;  %v243_v44 = vadd.f32 %v2055_v39, %v242_v42  ;;  %v1354_v45 = vpop.f32.mrb[1].mxu0  ;;  %v1389_v46 = vpop.f32.mrb[1].mxu1 }
  0xf9   :  { %v109_v47 = vcombine.high %v105_v43, %v105_v43  ;;  %v116_v48 = vrot.slane %v105_v43, %v2057_v40  ;;  %v247_v49 = vcombine.high %v243_v44, %v243_v44  ;;  %v254_v50 = vrot.slane %v243_v44, %v2057_v40 }
  0xfb   :  { %v123_v51 = vrot.slane %v109_v47, %v2057_v40  ;;  %v124_v52 = vcombine.high %v116_v48, %v116_v48  ;;  %v132_v53 = vrot.slane %v116_v48, %v2057_v40  ;;  %1145 = vst.sshfl [vmem:[%s2310_s3] sm:$0x1 pattern:$0x73625140] %v116_v48  ;;  %v261_v54 = vrot.slane %v247_v49, %v2057_v40 }
  0xfc   :  { %1150 = vst.sshfl [vmem:[%s2310_s3 + $0x1] sm:$0x1 pattern:$0x73625140] %v254_v50  ;;  %v262_v55 = vcombine.high %v254_v50, %v254_v50  ;;  %v270_v56 = vrot.slane %v254_v50, %v2057_v40 }
  0xfd   :  { %v125_v57 = vcombine.high %v123_v51, %v123_v51  ;;  %v139_v58 = vrot.slane %v123_v51, %v2057_v40  ;;  %v146_v59 = vrot.slane %v124_v52, %v2057_v40  ;;  %v154_v60 = vcombine.high %v132_v53, %v132_v53  ;;  %1146 = vst.sshfl [vmem:[%s2310_s3 + $0x8] sm:$0x1 pattern:$0x73625140] %v124_v52 }
  0xfe   :  { %1147 = vst.sshfl [vmem:[%s2310_s3 + $0x20] sm:$0x1 pattern:$0x73625140] %v123_v51  ;;  %v263_v61 = vcombine.high %v261_v54, %v261_v54  ;;  %v277_v62 = vrot.slane %v261_v54, %v2057_v40  ;;  %v284_v63 = vrot.slane %v262_v55, %v2057_v40  ;;  %v292_v0 = vcombine.high %v270_v56, %v270_v56 }
  0xff   :  { %1152 = vst.sshfl [vmem:[%s2310_s3 + $0x21] sm:$0x1 pattern:$0x73625140] %v261_v54  ;;  %v153_v1 = vrot.slane %v125_v57, %v2057_v40  ;;  %v155_v2 = vcombine.high %v139_v58, %v139_v58  ;;  %v156_v3 = vcombine.high %v146_v59, %v146_v59  ;;  %168 = vst [vmem:[%s2310_s3 + $0x10] sm:$0x1] %v154_v60 }
 0x100   :  { %1151 = vst.sshfl [vmem:[%s2310_s3 + $0x9] sm:$0x1 pattern:$0x73625140] %v262_v55  ;;  %v291_v4 = vrot.slane %v263_v61, %v2057_v40  ;;  %v293_v5 = vcombine.high %v277_v62, %v277_v62  ;;  %v294_v6 = vcombine.high %v284_v63, %v284_v63  ;;  %306 = vst [vmem:[%s2310_s3 + $0x11] sm:$0x1] %v292_v0 }
 0x101   :  { %1148 = vst.sshfl [vmem:[%s2310_s3 + $0x28] sm:$0x1 pattern:$0x73625140] %v125_v57  ;;  %v157_v7 = vcombine.high %v153_v1, %v153_v1  ;;  %169 = vst [vmem:[%s2310_s3 + $0x18] sm:$0x1] %v156_v3 }
 0x102   :  { %1153 = vst.sshfl [vmem:[%s2310_s3 + $0x29] sm:$0x1 pattern:$0x73625140] %v263_v61  ;;  %172 = vst [vmem:[%s2310_s3 + $0x30] sm:$0x1] %v155_v2  ;;  %v295_v8 = vcombine.high %v291_v4, %v291_v4 }
 0x103   :  { %307 = vst [vmem:[%s2310_s3 + $0x19] sm:$0x1] %v294_v6  ;;  %310 = vst [vmem:[%s2310_s3 + $0x31] sm:$0x1] %v293_v5 }
 0x104   :  { %173 = vst [vmem:[%s2310_s3 + $0x38] sm:$0x1] %v157_v7  ;;  %311 = vst [vmem:[%s2310_s3 + $0x39] sm:$0x1] %v295_v8 }
 0x116   :  { %v380_v9 = vpop.f32.mrb[2].mxu0  ;;  %v518_v10 = vpop.f32.mrb[2].mxu1 }
 0x117   :  { %v381_v11 = vadd.f32 %v2055_v39, %v380_v9  ;;  %v519_v12 = vadd.f32 %v2055_v39, %v518_v10  ;;  %v1424_v13 = vpop.f32.mrb[3].mxu0  ;;  %v1459_v14 = vpop.f32.mrb[3].mxu1 }
 0x119   :  { %v385_v15 = vcombine.high %v381_v11, %v381_v11  ;;  %v392_v16 = vrot.slane %v381_v11, %v2057_v40  ;;  %v523_v17 = vcombine.high %v519_v12, %v519_v12  ;;  %v530_v18 = vrot.slane %v519_v12, %v2057_v40 }
 0x11b   :  { %v399_v19 = vrot.slane %v385_v15, %v2057_v40  ;;  %v400_v20 = vcombine.high %v392_v16, %v392_v16  ;;  %v408_v21 = vrot.slane %v392_v16, %v2057_v40  ;;  %1155 = vst.sshfl [vmem:[%s2310_s3 + $0x2] sm:$0x1 pattern:$0x73625140] %v392_v16  ;;  %v537_v22 = vrot.slane %v523_v17, %v2057_v40 }
 0x11c   :  { %1160 = vst.sshfl [vmem:[%s2310_s3 + $0x3] sm:$0x1 pattern:$0x73625140] %v530_v18  ;;  %v538_v23 = vcombine.high %v530_v18, %v530_v18  ;;  %v546_v24 = vrot.slane %v530_v18, %v2057_v40 }
 0x11d   :  { %v401_v25 = vcombine.high %v399_v19, %v399_v19  ;;  %v415_v26 = vrot.slane %v399_v19, %v2057_v40  ;;  %v422_v27 = vrot.slane %v400_v20, %v2057_v40  ;;  %v430_v28 = vcombine.high %v408_v21, %v408_v21  ;;  %1156 = vst.sshfl [vmem:[%s2310_s3 + $0xa] sm:$0x1 pattern:$0x73625140] %v400_v20 }
 0x11e   :  { %1157 = vst.sshfl [vmem:[%s2310_s3 + $0x22] sm:$0x1 pattern:$0x73625140] %v399_v19  ;;  %v539_v29 = vcombine.high %v537_v22, %v537_v22  ;;  %v553_v30 = vrot.slane %v537_v22, %v2057_v40  ;;  %v560_v31 = vrot.slane %v538_v23, %v2057_v40  ;;  %v568_v32 = vcombine.high %v546_v24, %v546_v24 }
 0x11f   :  { %1162 = vst.sshfl [vmem:[%s2310_s3 + $0x23] sm:$0x1 pattern:$0x73625140] %v537_v22  ;;  %v429_v33 = vrot.slane %v401_v25, %v2057_v40  ;;  %v431_v34 = vcombine.high %v415_v26, %v415_v26  ;;  %v432_v35 = vcombine.high %v422_v27, %v422_v27  ;;  %444 = vst [vmem:[%s2310_s3 + $0x12] sm:$0x1] %v430_v28 }
 0x120   :  { %1161 = vst.sshfl [vmem:[%s2310_s3 + $0xb] sm:$0x1 pattern:$0x73625140] %v538_v23  ;;  %v567_v36 = vrot.slane %v539_v29, %v2057_v40  ;;  %v569_v37 = vcombine.high %v553_v30, %v553_v30  ;;  %v570_v38 = vcombine.high %v560_v31, %v560_v31  ;;  %582 = vst [vmem:[%s2310_s3 + $0x13] sm:$0x1] %v568_v32 }
 0x121   :  { %1158 = vst.sshfl [vmem:[%s2310_s3 + $0x2a] sm:$0x1 pattern:$0x73625140] %v401_v25  ;;  %v433_v41 = vcombine.high %v429_v33, %v429_v33  ;;  %445 = vst [vmem:[%s2310_s3 + $0x1a] sm:$0x1] %v432_v35 }
 0x122   :  { %1163 = vst.sshfl [vmem:[%s2310_s3 + $0x2b] sm:$0x1 pattern:$0x73625140] %v539_v29  ;;  %448 = vst [vmem:[%s2310_s3 + $0x32] sm:$0x1] %v431_v34  ;;  %v571_v42 = vcombine.high %v567_v36, %v567_v36 }
 0x123   :  { %583 = vst [vmem:[%s2310_s3 + $0x1b] sm:$0x1] %v570_v38  ;;  %586 = vst [vmem:[%s2310_s3 + $0x33] sm:$0x1] %v569_v37 }
 0x124   :  { %449 = vst [vmem:[%s2310_s3 + $0x3a] sm:$0x1] %v433_v41  ;;  %587 = vst [vmem:[%s2310_s3 + $0x3b] sm:$0x1] %v571_v42 }
 0x136   :  { %v656_v43 = vpop.f32.mrb[4].mxu0  ;;  %v794_v44 = vpop.f32.mrb[4].mxu1 }
 0x137   :  { %v657_v45 = vadd.f32 %v2055_v39, %v656_v43  ;;  %v795_v46 = vadd.f32 %v2055_v39, %v794_v44  ;;  %v1494_v47 = vpop.f32.mrb[5].mxu0  ;;  %v1529_v48 = vpop.f32.mrb[5].mxu1 }
 0x139   :  { %v661_v49 = vcombine.high %v657_v45, %v657_v45  ;;  %v668_v50 = vrot.slane %v657_v45, %v2057_v40  ;;  %v799_v51 = vcombine.high %v795_v46, %v795_v46  ;;  %v806_v52 = vrot.slane %v795_v46, %v2057_v40 }
 0x13b   :  { %v675_v53 = vrot.slane %v661_v49, %v2057_v40  ;;  %v676_v54 = vcombine.high %v668_v50, %v668_v50  ;;  %v684_v55 = vrot.slane %v668_v50, %v2057_v40  ;;  %1165 = vst.sshfl [vmem:[%s2310_s3 + $0x4] sm:$0x1 pattern:$0x73625140] %v668_v50  ;;  %v813_v56 = vrot.slane %v799_v51, %v2057_v40 }
 0x13c   :  { %1170 = vst.sshfl [vmem:[%s2310_s3 + $0x5] sm:$0x1 pattern:$0x73625140] %v806_v52  ;;  %v814_v57 = vcombine.high %v806_v52, %v806_v52  ;;  %v822_v58 = vrot.slane %v806_v52, %v2057_v40 }
 0x13d   :  { %v677_v59 = vcombine.high %v675_v53, %v675_v53  ;;  %v691_v60 = vrot.slane %v675_v53, %v2057_v40  ;;  %v698_v61 = vrot.slane %v676_v54, %v2057_v40  ;;  %v706_v62 = vcombine.high %v684_v55, %v684_v55  ;;  %1166 = vst.sshfl [vmem:[%s2310_s3 + $0xc] sm:$0x1 pattern:$0x73625140] %v676_v54 }
 0x13e   :  { %1167 = vst.sshfl [vmem:[%s2310_s3 + $0x24] sm:$0x1 pattern:$0x73625140] %v675_v53  ;;  %v815_v63 = vcombine.high %v813_v56, %v813_v56  ;;  %v829_v0 = vrot.slane %v813_v56, %v2057_v40  ;;  %v836_v1 = vrot.slane %v814_v57, %v2057_v40  ;;  %v844_v2 = vcombine.high %v822_v58, %v822_v58 }
 0x13f   :  { %1172 = vst.sshfl [vmem:[%s2310_s3 + $0x25] sm:$0x1 pattern:$0x73625140] %v813_v56  ;;  %v705_v3 = vrot.slane %v677_v59, %v2057_v40  ;;  %v707_v4 = vcombine.high %v691_v60, %v691_v60  ;;  %v708_v5 = vcombine.high %v698_v61, %v698_v61  ;;  %720 = vst [vmem:[%s2310_s3 + $0x14] sm:$0x1] %v706_v62 }
 0x140   :  { %1171 = vst.sshfl [vmem:[%s2310_s3 + $0xd] sm:$0x1 pattern:$0x73625140] %v814_v57  ;;  %v843_v6 = vrot.slane %v815_v63, %v2057_v40  ;;  %v845_v7 = vcombine.high %v829_v0, %v829_v0  ;;  %v846_v8 = vcombine.high %v836_v1, %v836_v1  ;;  %858 = vst [vmem:[%s2310_s3 + $0x15] sm:$0x1] %v844_v2 }
 0x141   :  { %1168 = vst.sshfl [vmem:[%s2310_s3 + $0x2c] sm:$0x1 pattern:$0x73625140] %v677_v59  ;;  %v709_v9 = vcombine.high %v705_v3, %v705_v3  ;;  %721 = vst [vmem:[%s2310_s3 + $0x1c] sm:$0x1] %v708_v5 }
 0x142   :  { %1173 = vst.sshfl [vmem:[%s2310_s3 + $0x2d] sm:$0x1 pattern:$0x73625140] %v815_v63  ;;  %724 = vst [vmem:[%s2310_s3 + $0x34] sm:$0x1] %v707_v4  ;;  %v847_v10 = vcombine.high %v843_v6, %v843_v6 }
 0x143   :  { %859 = vst [vmem:[%s2310_s3 + $0x1d] sm:$0x1] %v846_v8  ;;  %862 = vst [vmem:[%s2310_s3 + $0x35] sm:$0x1] %v845_v7 }
 0x144   :  { %725 = vst [vmem:[%s2310_s3 + $0x3c] sm:$0x1] %v709_v9  ;;  %863 = vst [vmem:[%s2310_s3 + $0x3d] sm:$0x1] %v847_v10 }
 0x156   :  { %v932_v11 = vpop.f32.mrb[6].mxu0  ;;  %v1070_v12 = vpop.f32.mrb[6].mxu1 }
 0x157   :  { %v933_v13 = vadd.f32 %v2055_v39, %v932_v11  ;;  %v1071_v14 = vadd.f32 %v2055_v39, %v1070_v12  ;;  %v1564_v15 = vpop.f32.mrb[7].mxu0  ;;  %v1599_v16 = vpop.f32.mrb[7].mxu1 }
 0x159   :  { %v937_v17 = vcombine.high %v933_v13, %v933_v13  ;;  %v944_v18 = vrot.slane %v933_v13, %v2057_v40  ;;  %v1075_v19 = vcombine.high %v1071_v14, %v1071_v14  ;;  %v1082_v20 = vrot.slane %v1071_v14, %v2057_v40 }
 0x15b   :  { %v951_v21 = vrot.slane %v937_v17, %v2057_v40  ;;  %v952_v22 = vcombine.high %v944_v18, %v944_v18  ;;  %v960_v23 = vrot.slane %v944_v18, %v2057_v40  ;;  %1175 = vst.sshfl [vmem:[%s2310_s3 + $0x6] sm:$0x1 pattern:$0x73625140] %v944_v18  ;;  %v1089_v24 = vrot.slane %v1075_v19, %v2057_v40 }
 0x15c   :  { %1180 = vst.sshfl [vmem:[%s2310_s3 + $0x7] sm:$0x1 pattern:$0x73625140] %v1082_v20  ;;  %v1090_v39 = vcombine.high %v1082_v20, %v1082_v20  ;;  %v1098_v25 = vrot.slane %v1082_v20, %v2057_v40 }
 0x15d   :  { %v953_v26 = vcombine.high %v951_v21, %v951_v21  ;;  %v967_v27 = vrot.slane %v951_v21, %v2057_v40  ;;  %v974_v28 = vrot.slane %v952_v22, %v2057_v40  ;;  %v982_v29 = vcombine.high %v960_v23, %v960_v23  ;;  %1176 = vst.sshfl [vmem:[%s2310_s3 + $0xe] sm:$0x1 pattern:$0x73625140] %v952_v22 }
 0x15e   :  { %1177 = vst.sshfl [vmem:[%s2310_s3 + $0x26] sm:$0x1 pattern:$0x73625140] %v951_v21  ;;  %v1091_v30 = vcombine.high %v1089_v24, %v1089_v24  ;;  %v1105_v31 = vrot.slane %v1089_v24, %v2057_v40  ;;  %v1112_v32 = vrot.slane %v1090_v39, %v2057_v40  ;;  %v1120_v33 = vcombine.high %v1098_v25, %v1098_v25 }
 0x15f   :  { %1182 = vst.sshfl [vmem:[%s2310_s3 + $0x27] sm:$0x1 pattern:$0x73625140] %v1089_v24  ;;  %v981_v34 = vrot.slane %v953_v26, %v2057_v40  ;;  %v983_v35 = vcombine.high %v967_v27, %v967_v27  ;;  %v984_v36 = vcombine.high %v974_v28, %v974_v28  ;;  %996 = vst [vmem:[%s2310_s3 + $0x16] sm:$0x1] %v982_v29 }
 0x160   :  { %1181 = vst.sshfl [vmem:[%s2310_s3 + $0xf] sm:$0x1 pattern:$0x73625140] %v1090_v39  ;;  %v1119_v37 = vrot.slane %v1091_v30, %v2057_v40  ;;  %v1121_v38 = vcombine.high %v1105_v31, %v1105_v31  ;;  %v1122_v41 = vcombine.high %v1112_v32, %v1112_v32  ;;  %1134 = vst [vmem:[%s2310_s3 + $0x17] sm:$0x1] %v1120_v33 }
 0x161   :  { %1178 = vst.sshfl [vmem:[%s2310_s3 + $0x2e] sm:$0x1 pattern:$0x73625140] %v953_v26  ;;  %v985_v42 = vcombine.high %v981_v34, %v981_v34  ;;  %997 = vst [vmem:[%s2310_s3 + $0x1e] sm:$0x1] %v984_v36 }
 0x162   :  { %1183 = vst.sshfl [vmem:[%s2310_s3 + $0x2f] sm:$0x1 pattern:$0x73625140] %v1091_v30  ;;  %1000 = vst [vmem:[%s2310_s3 + $0x36] sm:$0x1] %v983_v35  ;;  %v1123_v40 = vcombine.high %v1119_v37, %v1119_v37 }
 0x163   :  { %1135 = vst [vmem:[%s2310_s3 + $0x1f] sm:$0x1] %v1122_v41  ;;  %1138 = vst [vmem:[%s2310_s3 + $0x37] sm:$0x1] %v1121_v38 }
 0x164   :  { %1001 = vst [vmem:[%s2310_s3 + $0x3e] sm:$0x1] %v985_v42  ;;  %1139 = vst [vmem:[%s2310_s3 + $0x3f] sm:$0x1] %v1123_v40 }

</bundles_post_ra>
